<compile_context>
chip_gen: v6e
topology: v6e:2x2x1
jax: 0.10.0
libtpu: 0.0.40
codegen_flags: <defaults>
</compile_context>

<pallas_src>
import jax
import jax.numpy as jnp
from jax.experimental import pallas as pl
from jax.experimental.pallas import tpu as pltpu


def _round_up(x, m):
    return (x + m - 1) // m * m


def _ggnn_kernel(x_ref, adj_ref, w_ref, wih_ref, whh_ref, bih_ref, bhh_ref,
                 out_ref, h_ref, m_ref):
    """grid = (L, NT): outer axis = GGNN layer, inner axis = dst-node row tile.

    h_ref : (Np, Dp) f32   hidden state, resident in VMEM across all grid steps
    m_ref : (Np, Dp) bf16  per-layer messages m = h @ W[l], computed once at tile == 0
    """
    layer = pl.program_id(0)
    tile = pl.program_id(1)
    n_layers = pl.num_programs(0)
    TN = adj_ref.shape[0]
    Dp = w_ref.shape[-1]

    # Initialize hidden state from the (padded) node features.
    @pl.when(jnp.logical_and(layer == 0, tile == 0))
    def _():
        h_ref[...] = x_ref[...]

    # Once per layer, before any row of h is updated for this layer:
    #   m = h @ W[layer]  for ALL source nodes (kept bf16 to feed the MXU directly).
    @pl.when(tile == 0)
    def _():
        m_ref[...] = jnp.dot(
            h_ref[...].astype(jnp.bfloat16), w_ref[...],
            preferred_element_type=jnp.float32).astype(jnp.bfloat16)

    row = pl.ds(pl.multiple_of(tile * TN, TN), TN)
    h_t = h_ref[row, :]                                        # (TN, Dp) f32

    # aggr='add':  agg[i] = sum_e  w_e * m[src_e]  for dst_e == i   (dense adj row tile).
    agg = jnp.dot(adj_ref[...], m_ref[...],
                  preferred_element_type=jnp.float32)          # (TN, Dp) f32

    # GRUCell(input=agg, hidden=h). Gate-major, 128-lane-aligned weight blocks make the
    # gi/gh slices below fall exactly on vreg boundaries (pure full-width VPU/EUP work).
    gi = jnp.dot(agg.astype(jnp.bfloat16), wih_ref[...],
                 preferred_element_type=jnp.float32) + bih_ref[...]   # (TN, 3*Dp)
    gh = jnp.dot(h_t.astype(jnp.bfloat16), whh_ref[...],
                 preferred_element_type=jnp.float32) + bhh_ref[...]   # (TN, 3*Dp)

    r = jax.nn.sigmoid(gi[:, 0 * Dp:1 * Dp] + gh[:, 0 * Dp:1 * Dp])
    z = jax.nn.sigmoid(gi[:, 1 * Dp:2 * Dp] + gh[:, 1 * Dp:2 * Dp])
    n = jnp.tanh(gi[:, 2 * Dp:3 * Dp] + r * gh[:, 2 * Dp:3 * Dp])
    h_new = (1.0 - z) * n + z * h_t

    h_ref[row, :] = h_new

    # Only the final layer's result is observable -> skip the store on layers 0..L-2.
    @pl.when(layer == n_layers - 1)
    def _():
        out_ref[...] = h_new


def ggnn_forward(x, edge_index, edge_attr, W, w_ih, w_hh, b_ih, b_hh, *,
                 row_tile=128):
    """GGNN.forward(data) with data = (x, edge_index, edge_attr)."""
    N = x.shape[0]
    L, D, _ = W.shape

    Dp = _round_up(D, 128)          # lane-dense feature axis
    TN = row_tile                   # dst-node rows per grid step
    Np = _round_up(N, TN)           # node axis padded to the row tile
    n_tiles = Np // TN

    # GatedGraphConv zero-pads x up to out_channels; we additionally pad to (Np, Dp).
    x_p = jnp.zeros((Np, Dp), jnp.float32).at[:N, :x.shape[1]].set(
        x.astype(jnp.float32))

    # Dense adjacency A[dst, src] += edge_w (flow src -> dst, aggr='add'); accumulate in
    # f32 (duplicate edges add correctly), then cast to bf16 for the MXU.
    adj = jnp.zeros((Np, Np), jnp.float32).at[
        edge_index[1], edge_index[0]].add(edge_attr.astype(jnp.float32))
    adj = adj.astype(jnp.bfloat16)

    # Per-layer message weights, zero-padded to (L, Dp, Dp), bf16.
    W_p = jnp.zeros((L, Dp, Dp), jnp.float32).at[:, :D, :D].set(
        W.astype(jnp.float32)).astype(jnp.bfloat16)

    # GRU weights: gate-major and padded so each gate occupies its own 128-lane-aligned
    # Dp block of the 3*Dp output axis.  agg @ wih_t == [gi_r | gi_z | gi_n].
    def gate_blocks(w):                                       # w: (3*D, D) PyTorch layout
        g = jnp.transpose(w.astype(jnp.float32).reshape(3, D, D), (0, 2, 1))  # (g, in, out)
        g = jnp.zeros((3, Dp, Dp), jnp.float32).at[:, :D, :D].set(g)
        return jnp.transpose(g, (1, 0, 2)).reshape(Dp, 3 * Dp).astype(jnp.bfloat16)

    def gate_bias(b):                                         # (3*D,)
        return jnp.zeros((3, Dp), jnp.float32).at[:, :D].set(
            b.astype(jnp.float32).reshape(3, D)).reshape(1, 3 * Dp)

    wih_t = gate_blocks(w_ih)
    whh_t = gate_blocks(w_hh)
    bih = gate_bias(b_ih)
    bhh = gate_bias(b_hh)

    invariant = dict(pipeline_mode=pl.Buffered(1))   # grid-invariant inputs: 1 buffer

    out = pl.pallas_call(
        _ggnn_kernel,
        out_shape=jax.ShapeDtypeStruct((Np, Dp), jnp.float32),
        grid_spec=pltpu.PrefetchScalarGridSpec(
            num_scalar_prefetch=0,
            grid=(L, n_tiles),
            in_specs=[
                pl.BlockSpec((Np, Dp), lambda l, t: (0, 0), **invariant),      # x (init h)
                pl.BlockSpec((TN, Np), lambda l, t: (t, 0)),                   # adj row tile
                pl.BlockSpec((pl.Squeezed(), Dp, Dp), lambda l, t: (l, 0, 0)),  # W[l]
                pl.BlockSpec((Dp, 3 * Dp), lambda l, t: (0, 0), **invariant),  # GRU W_ih^T
                pl.BlockSpec((Dp, 3 * Dp), lambda l, t: (0, 0), **invariant),  # GRU W_hh^T
                pl.BlockSpec((1, 3 * Dp), lambda l, t: (0, 0), **invariant),   # GRU b_ih
                pl.BlockSpec((1, 3 * Dp), lambda l, t: (0, 0), **invariant),   # GRU b_hh
            ],
            out_specs=pl.BlockSpec((TN, Dp), lambda l, t: (t, 0)),
            scratch_shapes=[
                pltpu.VMEM((Np, Dp), jnp.float32),     # hidden state h (all layers)
                pltpu.VMEM((Np, Dp), jnp.bfloat16),    # per-layer messages m
            ],
        ),
        compiler_params=pltpu.CompilerParams(
            dimension_semantics=("arbitrary", "arbitrary"),
            vmem_limit_bytes=64 * 1024 * 1024),
    )(x_p, adj, W_p, wih_t, whh_t, bih, bhh)

    return out[:N, :D]


def ggnn_reference(x, edge_index, edge_attr, W, w_ih, w_hh, b_ih, b_hh):
    """Pure-JAX f32 reference (exact torch_geometric / nn.GRUCell semantics)."""
    N = x.shape[0]
    L, D, _ = W.shape
    if x.shape[1] < D:
        x = jnp.concatenate(
            [x, jnp.zeros((N, D - x.shape[1]), x.dtype)], axis=1)
    h = x.astype(jnp.float32)
    adj = jnp.zeros((N, N), jnp.float32).at[
        edge_index[1], edge_index[0]].add(edge_attr.astype(jnp.float32))
    for l in range(L):
        m = h @ W[l]
        agg = adj @ m
        gi = agg @ w_ih.T + b_ih
        gh = h @ w_hh.T + b_hh
        r = jax.nn.sigmoid(gi[:, 0 * D:1 * D] + gh[:, 0 * D:1 * D])
        z = jax.nn.sigmoid(gi[:, 1 * D:2 * D] + gh[:, 1 * D:2 * D])
        n = jnp.tanh(gi[:, 2 * D:3 * D] + r * gh[:, 2 * D:3 * D])
        h = (1.0 - z) * n + z * h
    return h


if __name__ == "__main__":
    key = jax.random.PRNGKey(0)
    k_x, k_ei, k_ea, k_w, k_ih, k_hh, k_bih, k_bhh = jax.random.split(key, 8)

    N = 200           # number of graph nodes (pads to Np=256 -> exercises 2 row tiles)
    D = 32            # input_dim == out_channels (hidden size)
    L = 3             # hidden_layers (num GGNN propagation steps)
    E = 600           # number of edges

    # data.x, data.edge_index, data.edge_attr
    x = jax.random.normal(k_x, (N, D), dtype=jnp.float32)
    edge_index = jax.random.randint(k_ei, (2, E), 0, N, dtype=jnp.int32)
    edge_attr = jax.random.uniform(k_ea, (E,), dtype=jnp.float32)

    # Deterministic parameter init (shapes per GatedGraphConv / nn.GRUCell).
    W = 0.1 * jax.random.normal(k_w, (L, D, D), dtype=jnp.float32)
    bound = 1.0 / jnp.sqrt(jnp.float32(D))
    w_ih = jax.random.uniform(k_ih, (3 * D, D), jnp.float32, -bound, bound)
    w_hh = jax.random.uniform(k_hh, (3 * D, D), jnp.float32, -bound, bound)
    b_ih = jax.random.uniform(k_bih, (3 * D,), jnp.float32, -bound, bound)
    b_hh = jax.random.uniform(k_bhh, (3 * D,), jnp.float32, -bound, bound)

    out = ggnn_forward(x, edge_index, edge_attr, W, w_ih, w_hh, b_ih, b_hh)
    out = jax.block_until_ready(out)

    ref = ggnn_reference(x, edge_index, edge_attr, W, w_ih, w_hh, b_ih, b_hh)
    if not jnp.allclose(out, ref, rtol=2e-2, atol=2e-2):
        max_err = jnp.max(jnp.abs(out - ref))
        raise AssertionError(
            f"Pallas GGNN output mismatch vs JAX reference (max abs err={max_err})")

    print("KERNEL_OK")
</pallas_src>

<mosaic_0001>
module attributes {stable_mosaic.version = 11 : i64} {
  func.func @_ggnn_kernel(%arg0: i32, %arg1: i32, %arg2: memref<256x128xf32, #tpu.memory_space<vmem>>, %arg3: memref<128x256xbf16, #tpu.memory_space<vmem>>, %arg4: memref<1x128x128xbf16, #tpu.memory_space<vmem>>, %arg5: memref<128x384xbf16, #tpu.memory_space<vmem>>, %arg6: memref<128x384xbf16, #tpu.memory_space<vmem>>, %arg7: memref<1x384xf32, #tpu.memory_space<vmem>>, %arg8: memref<1x384xf32, #tpu.memory_space<vmem>>, %arg9: memref<128x128xf32, #tpu.memory_space<vmem>>, %arg10: memref<256x128xf32, #tpu.memory_space<vmem>>, %arg11: memref<256x128xbf16, #tpu.memory_space<vmem>>) attributes {dimension_semantics = [#tpu.dimension_semantics<arbitrary>, #tpu.dimension_semantics<arbitrary>], iteration_bounds = array<i64: 3, 2>, scalar_prefetch = 0 : i64, scratch_operands = 2 : i64, tpu.core_type = #tpu.core_type<tc>, window_params = [{pipeline_mode = #tpu.pipeline_mode<synchronous>, transform_indices = @transform_0, window_bounds = array<i64: 256, 128>}, {transform_indices = @transform_1, window_bounds = array<i64: 128, 256>}, {transform_indices = @transform_2, window_bounds = array<i64: 1, 128, 128>}, {pipeline_mode = #tpu.pipeline_mode<synchronous>, transform_indices = @transform_3, window_bounds = array<i64: 128, 384>}, {pipeline_mode = #tpu.pipeline_mode<synchronous>, transform_indices = @transform_4, window_bounds = array<i64: 128, 384>}, {pipeline_mode = #tpu.pipeline_mode<synchronous>, transform_indices = @transform_5, window_bounds = array<i64: 1, 384>}, {pipeline_mode = #tpu.pipeline_mode<synchronous>, transform_indices = @transform_6, window_bounds = array<i64: 1, 384>}, {transform_indices = @transform_7, window_bounds = array<i64: 128, 128>}]} {
    %c0_i32 = arith.constant 0 : i32
    %0 = arith.cmpi eq, %arg0, %c0_i32 : i32
    %c0_i32_0 = arith.constant 0 : i32
    %1 = arith.cmpi eq, %arg1, %c0_i32_0 : i32
    %2 = arith.andi %0, %1 : i1
    %3 = arith.extui %2 : i1 to i32
    %c0_i32_1 = arith.constant 0 : i32
    %4 = arith.cmpi ne, %3, %c0_i32_1 : i32
    scf.if %4 {
      %c0_23 = arith.constant 0 : index
      %c0_24 = arith.constant 0 : index
      %58 = vector.load %arg2[%c0_23, %c0_24] : memref<256x128xf32, #tpu.memory_space<vmem>>, vector<256x128xf32>
      %c0_25 = arith.constant 0 : index
      %c0_26 = arith.constant 0 : index
      %59 = vector.load %arg10[%c0_25, %c0_26] : memref<256x128xf32, #tpu.memory_space<vmem>>, vector<256x128xf32>
      tpu.vector_store %arg10[%c0_25, %c0_26], %58 {strides = array<i32>} : memref<256x128xf32, #tpu.memory_space<vmem>>, vector<256x128xf32>,
    } else {
    }
    %c0_i32_2 = arith.constant 0 : i32
    %5 = arith.cmpi eq, %arg1, %c0_i32_2 : i32
    %6 = arith.extui %5 : i1 to i32
    %c0_i32_3 = arith.constant 0 : i32
    %7 = arith.cmpi ne, %6, %c0_i32_3 : i32
    scf.if %7 {
      %c0_23 = arith.constant 0 : index
      %c0_24 = arith.constant 0 : index
      %58 = vector.load %arg10[%c0_23, %c0_24] : memref<256x128xf32, #tpu.memory_space<vmem>>, vector<256x128xf32>
      %59 = arith.truncf %58 : vector<256x128xf32> to vector<256x128xbf16>
      %c0_25 = arith.constant 0 : index
      %c0_26 = arith.constant 0 : index
      %c0_27 = arith.constant 0 : index
      %60 = vector.load %arg4[%c0_25, %c0_26, %c0_27] : memref<1x128x128xbf16, #tpu.memory_space<vmem>>, vector<1x128x128xbf16>
      %61 = vector.shape_cast %60 : vector<1x128x128xbf16> to vector<128x128xbf16>
      %cst_28 = arith.constant dense<0.000000e+00> : vector<256x128xf32>
      %62 = tpu.matmul %59, %61, %cst_28 {dimension_numbers = #tpu.dot_dimension_numbers<[1], [0], [0], [1], [0, 0, 1, 1], [], []>} : vector<256x128xbf16>, vector<128x128xbf16>, vector<256x128xf32> -> vector<256x128xf32>
      %63 = arith.truncf %62 : vector<256x128xf32> to vector<256x128xbf16>
      %c0_29 = arith.constant 0 : index
      %c0_30 = arith.constant 0 : index
      %64 = vector.load %arg11[%c0_29, %c0_30] : memref<256x128xbf16, #tpu.memory_space<vmem>>, vector<256x128xbf16>
      tpu.vector_store %arg11[%c0_29, %c0_30], %63 {strides = array<i32>} : memref<256x128xbf16, #tpu.memory_space<vmem>>, vector<256x128xbf16>,
    } else {
    }
    %c128_i32 = arith.constant 128 : i32
    %8 = arith.muli %arg1, %c128_i32 : i32
    %9 = tpu.assume_multiple %8, 128 : i32
    %10 = arith.index_cast %9 : i32 to index
    %c0 = arith.constant 0 : index
    %11 = vector.load %arg10[%10, %c0] : memref<256x128xf32, #tpu.memory_space<vmem>>, vector<128x128xf32>
    %c0_4 = arith.constant 0 : index
    %c0_5 = arith.constant 0 : index
    %12 = vector.load %arg3[%c0_4, %c0_5] : memref<128x256xbf16, #tpu.memory_space<vmem>>, vector<128x256xbf16>
    %c0_6 = arith.constant 0 : index
    %c0_7 = arith.constant 0 : index
    %13 = vector.load %arg11[%c0_6, %c0_7] : memref<256x128xbf16, #tpu.memory_space<vmem>>, vector<256x128xbf16>
    %cst = arith.constant dense<0.000000e+00> : vector<128x128xf32>
    %14 = tpu.matmul %12, %13, %cst {dimension_numbers = #tpu.dot_dimension_numbers<[1], [0], [0], [1], [0, 0, 1, 1], [], []>} : vector<128x256xbf16>, vector<256x128xbf16>, vector<128x128xf32> -> vector<128x128xf32>
    %15 = arith.truncf %14 : vector<128x128xf32> to vector<128x128xbf16>
    %c0_8 = arith.constant 0 : index
    %c0_9 = arith.constant 0 : index
    %16 = vector.load %arg5[%c0_8, %c0_9] : memref<128x384xbf16, #tpu.memory_space<vmem>>, vector<128x384xbf16>
    %cst_10 = arith.constant dense<0.000000e+00> : vector<128x384xf32>
    %17 = tpu.matmul %15, %16, %cst_10 {dimension_numbers = #tpu.dot_dimension_numbers<[1], [0], [0], [1], [0, 0, 1, 1], [], []>} : vector<128x128xbf16>, vector<128x384xbf16>, vector<128x384xf32> -> vector<128x384xf32>
    %c0_11 = arith.constant 0 : index
    %c0_12 = arith.constant 0 : index
    %18 = vector.load %arg7[%c0_11, %c0_12] : memref<1x384xf32, #tpu.memory_space<vmem>>, vector<1x384xf32>
    %19 = vector.broadcast %18 : vector<1x384xf32> to vector<128x384xf32>
    %20 = arith.addf %17, %19 : vector<128x384xf32>
    %21 = arith.truncf %11 : vector<128x128xf32> to vector<128x128xbf16>
    %c0_13 = arith.constant 0 : index
    %c0_14 = arith.constant 0 : index
    %22 = vector.load %arg6[%c0_13, %c0_14] : memref<128x384xbf16, #tpu.memory_space<vmem>>, vector<128x384xbf16>
    %cst_15 = arith.constant dense<0.000000e+00> : vector<128x384xf32>
    %23 = tpu.matmul %21, %22, %cst_15 {dimension_numbers = #tpu.dot_dimension_numbers<[1], [0], [0], [1], [0, 0, 1, 1], [], []>} : vector<128x128xbf16>, vector<128x384xbf16>, vector<128x384xf32> -> vector<128x384xf32>
    %c0_16 = arith.constant 0 : index
    %c0_17 = arith.constant 0 : index
    %24 = vector.load %arg8[%c0_16, %c0_17] : memref<1x384xf32, #tpu.memory_space<vmem>>, vector<1x384xf32>
    %25 = vector.broadcast %24 : vector<1x384xf32> to vector<128x384xf32>
    %26 = arith.addf %23, %25 : vector<128x384xf32>
    %27 = vector.extract_strided_slice %20 {offsets = [0, 0], sizes = [128, 128], strides = [1, 1]} : vector<128x384xf32> to vector<128x128xf32>
    %28 = vector.extract_strided_slice %26 {offsets = [0, 0], sizes = [128, 128], strides = [1, 1]} : vector<128x384xf32> to vector<128x128xf32>
    %29 = arith.addf %27, %28 : vector<128x128xf32>
    %30 = arith.negf %29 : vector<128x128xf32>
    %31 = math.exp %30 : vector<128x128xf32>
    %cst_18 = arith.constant 1.000000e+00 : f32
    %32 = vector.broadcast %cst_18 : f32 to vector<128x128xf32>
    %33 = arith.addf %32, %31 : vector<128x128xf32>
    %34 = arith.divf %32, %33 : vector<128x128xf32>
    %35 = vector.extract_strided_slice %20 {offsets = [0, 128], sizes = [128, 128], strides = [1, 1]} : vector<128x384xf32> to vector<128x128xf32>
    %36 = vector.extract_strided_slice %26 {offsets = [0, 128], sizes = [128, 128], strides = [1, 1]} : vector<128x384xf32> to vector<128x128xf32>
    %37 = arith.addf %35, %36 : vector<128x128xf32>
    %38 = arith.negf %37 : vector<128x128xf32>
    %39 = math.exp %38 : vector<128x128xf32>
    %cst_19 = arith.constant 1.000000e+00 : f32
    %40 = vector.broadcast %cst_19 : f32 to vector<128x128xf32>
    %41 = arith.addf %40, %39 : vector<128x128xf32>
    %42 = arith.divf %40, %41 : vector<128x128xf32>
    %43 = vector.extract_strided_slice %20 {offsets = [0, 256], sizes = [128, 128], strides = [1, 1]} : vector<128x384xf32> to vector<128x128xf32>
    %44 = vector.extract_strided_slice %26 {offsets = [0, 256], sizes = [128, 128], strides = [1, 1]} : vector<128x384xf32> to vector<128x128xf32>
    %45 = arith.mulf %34, %44 : vector<128x128xf32>
    %46 = arith.addf %43, %45 : vector<128x128xf32>
    %47 = math.tanh %46 : vector<128x128xf32>
    %cst_20 = arith.constant 1.000000e+00 : f32
    %48 = vector.broadcast %cst_20 : f32 to vector<128x128xf32>
    %49 = arith.subf %48, %42 : vector<128x128xf32>
    %50 = arith.mulf %49, %47 : vector<128x128xf32>
    %51 = arith.mulf %42, %11 : vector<128x128xf32>
    %52 = arith.addf %50, %51 : vector<128x128xf32>
    %53 = arith.index_cast %9 : i32 to index
    %c0_21 = arith.constant 0 : index
    %54 = vector.load %arg10[%53, %c0_21] : memref<256x128xf32, #tpu.memory_space<vmem>>, vector<128x128xf32>
    tpu.vector_store %arg10[%53, %c0_21], %52 {strides = array<i32>} : memref<256x128xf32, #tpu.memory_space<vmem>>, vector<128x128xf32>,
    %c2_i32 = arith.constant 2 : i32
    %55 = arith.cmpi eq, %arg0, %c2_i32 : i32
    %56 = arith.extui %55 : i1 to i32
    %c0_i32_22 = arith.constant 0 : i32
    %57 = arith.cmpi ne, %56, %c0_i32_22 : i32
    scf.if %57 {
      %c0_23 = arith.constant 0 : index
      %c0_24 = arith.constant 0 : index
      %58 = vector.load %arg9[%c0_23, %c0_24] : memref<128x128xf32, #tpu.memory_space<vmem>>, vector<128x128xf32>
      tpu.vector_store %arg9[%c0_23, %c0_24], %52 {strides = array<i32>} : memref<128x128xf32, #tpu.memory_space<vmem>>, vector<128x128xf32>,
    } else {
    }
    return
  }
  func.func @transform_0(%arg0: i32, %arg1: i32) -> (i32, i32) {
    %c0_i32 = arith.constant 0 : i32
    %c0_i32_0 = arith.constant 0 : i32
    %c0_i32_1 = arith.constant 0 : i32
    return %c0_i32, %c0_i32_0 : i32, i32
  }
  func.func @transform_1(%arg0: i32, %arg1: i32) -> (i32, i32) {
    %c0_i32 = arith.constant 0 : i32
    %c0_i32_0 = arith.constant 0 : i32
    return %arg1, %c0_i32 : i32, i32
  }
  func.func @transform_2(%arg0: i32, %arg1: i32) -> (i32, i32, i32) {
    %c0_i32 = arith.constant 0 : i32
    %c0_i32_0 = arith.constant 0 : i32
    %c0_i32_1 = arith.constant 0 : i32
    return %arg0, %c0_i32, %c0_i32_0 : i32, i32, i32
  }
  func.func @transform_3(%arg0: i32, %arg1: i32) -> (i32, i32) {
    %c0_i32 = arith.constant 0 : i32
    %c0_i32_0 = arith.constant 0 : i32
    %c0_i32_1 = arith.constant 0 : i32
    return %c0_i32, %c0_i32_0 : i32, i32
  }
  func.func @transform_4(%arg0: i32, %arg1: i32) -> (i32, i32) {
    %c0_i32 = arith.constant 0 : i32
    %c0_i32_0 = arith.constant 0 : i32
    %c0_i32_1 = arith.constant 0 : i32
    return %c0_i32, %c0_i32_0 : i32, i32
  }
  func.func @transform_5(%arg0: i32, %arg1: i32) -> (i32, i32) {
    %c0_i32 = arith.constant 0 : i32
    %c0_i32_0 = arith.constant 0 : i32
    %c0_i32_1 = arith.constant 0 : i32
    return %c0_i32, %c0_i32_0 : i32, i32
  }
  func.func @transform_6(%arg0: i32, %arg1: i32) -> (i32, i32) {
    %c0_i32 = arith.constant 0 : i32
    %c0_i32_0 = arith.constant 0 : i32
    %c0_i32_1 = arith.constant 0 : i32
    return %c0_i32, %c0_i32_0 : i32, i32
  }
  func.func @transform_7(%arg0: i32, %arg1: i32) -> (i32, i32) {
    %c0_i32 = arith.constant 0 : i32
    %c0_i32_0 = arith.constant 0 : i32
    return %arg1, %c0_i32 : i32, i32
  }
}

</mosaic_0001>

<bundles_post_ra>
// kernel: tpu_custom_call.1
= control target key start
LH: loop header
LB: loop body
LE: loop exit
PB: predicated region body
PF: predicated region fallthrough
CT: control target
= control target key end

     0   :  { %s4730_s0 = inlined_call_operand.hbm [shape: f32[256,128], index: 0, kind: input, shape index: {}]   ;;  %s4731_s1 = inlined_call_operand.hbm [shape: bf16[256,256], index: 1, kind: input, shape index: {}]   ;;  %s4732_s2 = inlined_call_operand.hbm [shape: bf16[3,128,128], index: 2, kind: input, shape index: {}]   ;;  %s4733_s3 = inlined_call_operand.hbm [shape: bf16[128,384], index: 3, kind: input, shape index: {}]   ;;  %s4734_s4 = inlined_call_operand.hbm [shape: bf16[128,384], index: 4, kind: input, shape index: {}]   ;;  %s4735_s5 = inlined_call_operand.vmem [shape: f32[1,384], index: 5, kind: input, shape index: {}]   ;;  %s4736_s6 = inlined_call_operand.vmem [shape: f32[1,384], index: 6, kind: input, shape index: {}]   ;;  %s4737_s7 = inlined_call_operand.hbm [shape: f32[256,128], index: 7, kind: output, shape index: {}]  }
   0x1   :  { %4761 = sst [smem:[#allocation37_spill]] %s4731_s1 }
   0x2   :  { %4762 = sst [smem:[#allocation38_spill]] %s4733_s3 }
   0x3   :  { %4763 = sst [smem:[#allocation39_spill]] %s4735_s5 }
   0x4   :  { %4764 = sst [smem:[#allocation40_spill]] %s4736_s6 }
   0x5   :  { %4765 = sst [smem:[#allocation41_spill]] %s4737_s7 }
   0x6   :  { %12 = vsyncpa [#allocation5], 0 }
   0x7   :  { %13 = vsyncpa [#allocation8], 0 }
   0x8   :  { %15 = vsyncpa [#allocation8 + $0x1], 0 }
   0x9   :  { %16 = vsyncpa [#allocation11], 0 }
   0xa   :  { %17 = vsyncpa [#allocation6], 0 }
   0xb   :  { %19 = vsyncpa [#allocation6 + $0x1], 0  ;;  %s3862_s24 = smov 0   ;;  %s3864_s25 = smov 0  }
   0xc   :  { %s3866_s26 = smov 0   ;;  %s3868_s27 = smov 0  }
   0xd   :  { %s3870_s28 = smov 0   ;;  %s3872_s29 = smov 0  }
   0xe   :  { %s3874_s30 = smov 0   ;;  %s3876_s8 = smov 0  }
   0xf   :  { %s3878_s9 = smov 0   ;;  %s3880_s10 = smov 0  }
  0x10   :  { %s3882_s11 = smov 0  }
  0x11 LB: > { %4766 = sst [smem:[#allocation19_spill]] %s3777_s27  ;;  %s3916_s12 = sadd.s32 4294967295, %s3805_s11   ;;  %s3805_s11 = sphi %s3882_s11, %s25_s11   ;;  %s3801_s10 = sphi %s3880_s10, %s4848_s10   ;;  %s3797_s9 = sphi %s3878_s9, %s4847_s9   ;;  %s3793_s8 = sphi %s3876_s8, %s4846_s8   ;;  %s3789_s30 = sphi %s3874_s30, %s4845_s30   ;;  %s3785_s29 = sphi %s3872_s29, %s4844_s29   ;;  %s3781_s28 = sphi %s3870_s28, %s4843_s28   ;;  %s3777_s27 = sphi %s3868_s27, %s4842_s27   ;;  %s3773_s26 = sphi %s3866_s26, %s4841_s26   ;;  %s3769_s25 = sphi %s3864_s25, %s4840_s25   ;;  %s3765_s24 = sphi %s3862_s24, %s4839_s24  }
  0x12   : > { %4767 = sst [smem:[#allocation20_spill]] %s3789_s30  ;;  %s2553_s13 = sadd.s32 4294967294, %s3805_s11  }
  0x13   : > { %4768 = sst [smem:[#allocation21_spill]] %s3793_s8  ;;  %p78_p0 = scmp.ne.s32.totalorder %s3781_s28, %s3777_s27 }
  0x14   : > { %p4747_p1 = scmp.eq.s32.totalorder %s3916_s12, 0  ;;  %p104_p2 = scmp.ne.s32.totalorder %s3769_s25, %s3765_s24 }
  0x15   : > { %p218_p5 = scmp.eq.s32.totalorder %s2553_s13, 5  ;;  %p2554_p7 = scmp.ge.s32.totalorder %s3805_s11, 1 }
  0x16   : > { %p3926_p4 = por %p4747_p1, %p78_p0  ;;  %p3932_p6 = por %p104_p2, %p4747_p1 }
  0x17   : > { %p3937_p8 = por %p218_p5, %p78_p0  ;;  %p225_p9 = scmp.lt.s32.totalorder %s3805_s11, 7 }
  0x18   : > { %s4769_s14 = scalar_select %p3926_p4, 1, 0 }
  0x19   : > { %s4771_s15 = scalar_select %p3932_p6, 1, 0 }
  0x1a   : > { %4770 = sst [smem:[#allocation22_spill]] %s4769_s14  ;;  %p3942_p10 = pnand %p2554_p7, %p225_p9 }
  0x1b   : > { %4772 = sst [smem:[#allocation23_spill]] %s4771_s15  ;;  %s3807_s18 = smov [#allocation10]  }
  0x1c   : > { %s4773_s16 = scalar_select %p3937_p8, 1, 0 }
  0x1d   : > { %s4775_s17 = scalar_select %p3942_p10, 1, 0 }
  0x1e   : > { %4774 = sst [smem:[#allocation24_spill]] %s4773_s16  ;;  %s250_s19 = sshll.u32 %s3807_s18, 4  ;;  %s251_s19 = int_to_ptr.vmem [resolvable:$true] %s250_s19 }
  0x1f   : > { %p3130_p11 = pneg %p3942_p10  ;;  %s34_s21 = sadd.s32 1, %s3797_s9 }
  0x20   : > { %s3550_s22 = scalar_lea.vmem %s251_s19, 3072  ;;  %p3558_p7 = scmp.lt.s32.totalorder %s251_s19, %s251_s19 }
  0x21   : > { %p3950_p12 = pnand %p3130_p11, %p4747_p1  ;;  %p3551_p0 = scmp.ne.s32.totalorder %s251_s19, %s3550_s22 }
  0x22   : > { %p3559_p9 = scmp.lt.s32.totalorder %s3550_s22, %s3550_s22 }
  0x23   : > { %p4749_p13 = pneg %p3950_p12 }
  0x24   : > { %p3560_p3 = por %p3559_p9, %p3558_p7 }
  0x25   : > { %p3553_p2 = pnand %p3551_p0, %p4749_p13 }
  0x27   : > { %p3554_p5 = pneg %p3553_p2 }
  0x29   : > { %p3561_p8 = pnand %p3560_p3, %p3554_p5 }
  0x2b   : > { %3564 = shalt.err (!%p3561_p8)
}
  0x2c   : > { %s4740_s23 = smov 192   ;;  %s4741_s24 = smov 12  }
  0x2d   : > { %s4777_s3 = sld [smem:[#allocation38_spill]]  ;;  %p3968_p3 = scmp.ge.s32.totalorder %s34_s21, 2 }
  0x2e   : > { %s65_s16 = sadd.s32 1, %s3785_s29  ;;  %p72_p8 = scmp.ne.s32.totalorder %s3785_s29, %s3781_s28 }
  0x2f   : > { %s4778_s22 = scalar_select %p3968_p3, 1, 0 }
  0x30   : > { %p4748_p11 = scmp.eq.s32.totalorder %s3805_s11, 0  ;;  %s4850_s21 = smov (%p3968_p3, %s34_s21), 0 }
  0x31   : > { %p4780_p2 = scmp.eq.s32.totalorder %s3916_s12, 5  ;;  %s62_s13 = ssub.s32 %s3797_s9, %s4850_s21 }
  0x32   : > { %p3982_p0 = por %p4748_p11, %p72_p8  ;;  %p63_p7 = scmp.eq.s32.totalorder %s62_s13, 0 }
  0x33   : > { %3136 = dma.hbm_to_vmem [thread:$0]  (!%p3950_p12), %s4777_s3, 3072, %s251_s19, [#allocation11], %s4740_s23, %s4740_s23, %s4741_s24  }
  0x34   : > { %p3988_p5 = por %p4780_p2, %p72_p8  ;;  %p4751_p9 = scmp.lt.s32.totalorder %s3805_s11, 6 }
  0x35   : > { %s283_s18 = sand.u32 1, %s3805_s11   ;;  %s285_s24 = sand.u32 1, %s3785_s29  }
  0x36   : > { %s4781_s19 = scalar_select %p3988_p5, 1, 0 }
  0x37   : > { %s3997_s23 = scalar_select %p63_p7, %s3785_s29, %s65_s16  }
  0x38   : > { %s2559_s3 = sshll.u32 %s285_s24, 7  ;;  %s2734_s7 = sshll.u32 %s3797_s9, 11 }
  0x39   : > { %s4782_s1 = sld [smem:[#allocation37_spill]]  ;;  %s287_s8 = scalar_lea.vmem [#allocation7], %s2559_s3 }
  0x3a   : > { %s295_s15 = sshll.u32 %s287_s8, 4  ;;  %p4008_p8 = pnand %p4751_p9, %p3982_p0  ;;  %s296_s15 = int_to_ptr.vmem [resolvable:$true] %s295_s15 }
  0x3b   : > { %s4012_s13 = scalar_lea.sflag [#allocation8], %s283_s18  ;;  %s3578_s16 = scalar_lea.vmem %s296_s15, 2048 }
  0x3c   : > { %p3567_p2 = pneg %p4008_p8  ;;  %p3579_p7 = scmp.ne.s32.totalorder %s296_s15, %s3578_s16 }
  0x3d   : > { %s3810_s5 = smov [#allocation7]  }
  0x3e   : > { %p3581_p1 = pnand %p3579_p7, %p3567_p2  ;;  %s3583_s6 = sshll.u32 %s3810_s5, 4  ;;  %s3584_s6 = int_to_ptr.vmem [resolvable:$false] %s3583_s6 }
  0x3f   : > { %s294_s30 = scalar_lea.hbm %s4782_s1, %s2734_s7  ;;  %s3585_s3 = scalar_lea.vmem %s3584_s6, 4096 }
  0x40   : > { %p3582_p11 = pneg %p3581_p1  ;;  %p3586_p13 = scmp.lt.s32.totalorder %s296_s15, %s3584_s6 }
  0x41   : > { %p3587_p5 = scmp.lt.s32.totalorder %s3585_s3, %s3578_s16 }
  0x43   : > { %p3588_p0 = por %p3587_p5, %p3586_p13 }
  0x45   : > { %p3589_p9 = pnand %p3588_p0, %p3582_p11 }
  0x47   : > { %3592 = shalt.err (!%p3589_p9)
}
  0x48   : > { %s3811_s7 = smov 128   ;;  %s3812_s27 = smov 8  }
  0x49   : > { %3143 = dma.hbm_to_vmem [thread:$0]  (!%p4008_p8), %s294_s30, 2048, %s296_s15, %s4012_s13, %s3811_s7, %s3811_s7, %s3812_s27  }
  0x4a   : > { %s3813_s8 = smov [#allocation4]   ;;  %s3814_s18 = smov [#allocation12]  }
  0x4b   : > { %s237_s24 = sshll.u32 %s3813_s8, 4  ;;  %s263_s1 = sshll.u32 %s3814_s18, 4  ;;  %s238_s24 = int_to_ptr.vmem [resolvable:$true] %s237_s24  ;;  %s264_s1 = int_to_ptr.vmem [resolvable:$true] %s263_s1 }
  0x4c   : > { %s3604_s5 = scalar_lea.vmem %s238_s24, 4096  ;;  %p4784_p2 = pneg %p3950_p12 }
  0x4d   : > { %p3605_p1 = scmp.ne.s32.totalorder %s238_s24, %s3604_s5  ;;  %p3612_p5 = scmp.lt.s32.totalorder %s238_s24, %s238_s24 }
  0x4e   : > { %p3613_p9 = scmp.lt.s32.totalorder %s3604_s5, %s3604_s5 }
  0x4f   : > { %p3607_p13 = pnand %p3605_p1, %p4784_p2 }
  0x50   : > { %p3614_p7 = por %p3613_p9, %p3612_p5 }
  0x51   : > { %p3608_p11 = pneg %p3607_p13 }
  0x53   : > { %p3615_p0 = pnand %p3614_p7, %p3608_p11 }
  0x55   : > { %3618 = shalt.err (!%p3615_p0)
}
  0x56   : > { %3133 = dma.hbm_to_vmem [thread:$0]  (!%p3950_p12), %s4730_s0, 4096, %s238_s24, [#allocation5], %s3811_s7, %s3811_s7, %s3812_s27  }
  0x57   : > { %s3630_s15 = scalar_lea.vmem %s264_s1, 3072  ;;  %p4785_p6 = pmov %p4784_p2 }
  0x58   : > { %p3631_p8 = scmp.ne.s32.totalorder %s264_s1, %s3630_s15  ;;  %p3638_p1 = scmp.lt.s32.totalorder %s264_s1, %s264_s1 }
  0x59   : > { %p3639_p2 = scmp.lt.s32.totalorder %s3630_s15, %s3630_s15 }
  0x5a   : > { %p3633_p4 = pnand %p3631_p8, %p4785_p6 }
  0x5b   : > { %p3640_p13 = por %p3639_p2, %p3638_p1 }
  0x5c   : > { %p3634_p10 = pneg %p3633_p4 }
  0x5e   : > { %p3641_p3 = pnand %p3640_p13, %p3634_p10 }
  0x60   : > { %3644 = shalt.err (!%p3641_p3)
}
  0x61   : > { %s4786_s16 = smov 12   ;;  %s4787_s6 = smov 192  }
  0x62   : > { %3139 = dma.hbm_to_vmem [thread:$0]  (!%p3950_p12), %s4734_s4, 3072, %s264_s1, [#allocation11], %s4787_s6, %s4787_s6, %s4786_s16  }
  0x63   : > { %s37_s7 = sadd.s32 1, %s3801_s10  ;;  %s91_s20 = sadd.s32 1, %s3773_s26 }
  0x64   : > { %p4788_p4 = scmp.ne.s32.totalorder %s4778_s22, 0  ;;  %p98_p6 = scmp.ne.s32.totalorder %s3773_s26, %s3769_s25 }
  0x65   : > { %s307_s27 = sand.u32 1, %s3773_s26   ;;  %p4789_p3 = scmp.eq.s32.totalorder %s3805_s11, 0 }
  0x66   : > { %s4852_s7 = smov (!%p4788_p4, %s37_s7), %s3801_s10  ;;  %s2563_s24 = sshll.u32 %s307_s27, 6 }
  0x67   : > { %p39_p10 = scmp.ge.s32.totalorder %s4852_s7, 3  ;;  %p100_p11 = por %p98_p6, %p4789_p3 }
  0x68   : > { %s2735_s18 = sshll.u32 %s3801_s10, 10  ;;  %s309_s5 = scalar_lea.vmem [#allocation9], %s2563_s24 }
  0x69   : > { %s4854_s7 = smov (%p39_p10, %s4852_s7), 0  ;;  %s316_s30 = sshll.u32 %s309_s5, 4  ;;  %s317_s30 = int_to_ptr.vmem [resolvable:$true] %s316_s30 }
  0x6a   : > { %s88_s14 = ssub.s32 %s3801_s10, %s4854_s7  ;;  %s315_s16 = scalar_lea.hbm %s4732_s2, %s2735_s18 }
  0x6b   : > { %p89_p12 = scmp.eq.s32.totalorder %s88_s14, 0  ;;  %p4790_p5 = scmp.lt.s32.totalorder %s3805_s11, 6 }
  0x6c   : > { %s3658_s3 = scalar_lea.vmem %s317_s30, 1024  ;;  %s3815_s8 = smov [#allocation9]  }
  0x6d   : > { %p4058_p9 = pnand %p4790_p5, %p100_p11  ;;  %p3659_p0 = scmp.ne.s32.totalorder %s317_s30, %s3658_s3 }
  0x6e   : > { %s4063_s6 = scalar_select %p89_p12, %s3773_s26, %s91_s20  }
  0x6f   : > { %p3647_p7 = pneg %p4058_p9  ;;  %s3663_s27 = sshll.u32 %s3815_s8, 4  ;;  %s3664_s27 = int_to_ptr.vmem [resolvable:$false] %s3663_s27 }
  0x70   : > { %s3665_s24 = scalar_lea.vmem %s3664_s27, 2048  ;;  %p3666_p2 = scmp.lt.s32.totalorder %s317_s30, %s3664_s27 }
  0x71   : > { %p3661_p8 = pnand %p3659_p0, %p3647_p7  ;;  %p3667_p13 = scmp.lt.s32.totalorder %s3665_s24, %s3658_s3 }
  0x73   : > { %p3662_p1 = pneg %p3661_p8  ;;  %p3668_p4 = por %p3667_p13, %p3666_p2 }
  0x75   : > { %p3669_p6 = pnand %p3668_p4, %p3662_p1 }
  0x77   : > { %3672 = shalt.err (!%p3669_p6)
}
  0x78   : > { %s3816_s18 = smov 64   ;;  %s3817_s20 = smov 4  }
  0x79   : > { %3146 = dma.hbm_to_vmem [thread:$0]  (!%p4058_p9), %s315_s16, 1024, %s317_s30, %s4012_s13, %s3816_s18, %s3816_s18, %s3817_s20  }
  0x7a   : > { %p4792_p10 = scmp.ne.s32.totalorder %s4775_s17, 0 }
  0x7c   : > { %328 = sbr.rel (%p4792_p10) target bundleno = 1121 (0x461), region = 48 }
  0x81   : > { %p4793_p3 = scmp.eq.s32.totalorder %s3916_s12, 0 }
  0x83   : > { %3744 = dma.done.wait (%p4793_p3), [#allocation5], 4096   ;;  %p4794_p11 = pmov %p4793_p3 }
  0x84   : > { %s4795_s5 = sld [smem:[#allocation22_spill]]  ;;  %s334_s14 = sand.u32 1, %s3916_s12  }
  0x85   : > { %3746 = vsyncadd (%p4794_p11), [#allocation5], 4294963200  ;;  %s336_s1 = sand.u32 1, %s3781_s28   ;;  %s335_s3 = scalar_lea.sflag [#allocation8], %s334_s14 }
  0x86   : > { %s2568_s15 = sshll.u32 %s336_s1, 7 }
  0x87   : > { %s4080_s22 = scalar_lea.vmem [#allocation7], %s2568_s15 }
  0x8a   : > { %p4796_p12 = scmp.ne.s32.totalorder %s4795_s5, 0 }
  0x8c   : > { %3748 = dma.done.wait (%p4796_p12), %s335_s3, 2048  }
  0x8d   : > { %3750 = vsyncadd (%p4796_p12), %s335_s3, 4294965248  ;;  %s4797_s17 = sld [smem:[#allocation23_spill]]  ;;  %s345_s13 = sand.u32 1, %s3769_s25  }
  0x8e   : > { %s2569_s30 = sshll.u32 %s345_s13, 6 }
  0x8f   : > { %s4087_s16 = scalar_lea.vmem [#allocation9], %s2569_s30 }
  0x93   : > { %p4798_p5 = scmp.ne.s32.totalorder %s4797_s17, 0 }
  0x95   : > { %3752 = dma.done.wait (%p4798_p5), %s335_s3, 1024  }
  0x96   : > { %3754 = vsyncadd (%p4798_p5), %s335_s3, 4294966272  ;;  %p4799_p9 = pmov %p4793_p3 }
  0x97   : > { %p4800_p7 = pmov %p4793_p3 }
  0x98   : > { %3756 = dma.done.wait (%p4799_p9), [#allocation11], 6144  }
  0x99   : > { %3758 = vsyncadd (%p4800_p7), [#allocation11], 4294961152  ;;  %s4801_s8 = sld [smem:[#allocation21_spill]]  ;;  %s4099_s24 = scalar_lea.vmem [#allocation13], %s2568_s15 }
  0x9a   : > { %s4802_s27 = sld [smem:[#allocation20_spill]] }
  0x9f   : > { %p394_p0 = scmp.eq.s32.totalorder %s4801_s8, 0 }
  0xa0   : > { %p395_p8 = scmp.eq.s32.totalorder %s4802_s27, 0 }
  0xa2   : > { %p396_p1 = pnand %p395_p8, %p394_p0 }
  0xa4   : > { %399 = sbr.rel (%p396_p1) target bundleno = 186 (0xba), region = 72 }
  0xa9   : > { %v400_v0 = vld [vmem:[#allocation4] sm:$0xff]  ;;  %v401_v1 = vld [vmem:[#allocation4 + $0x8] sm:$0xff]  ;;  %v402_v2 = vld [vmem:[#allocation4 + $0x10] sm:$0xff] }
  0xaa   : > { %432 = vst [vmem:[#allocation2] sm:$0xff] %v400_v0  ;;  %433 = vst [vmem:[#allocation2 + $0x8] sm:$0xff] %v401_v1  ;;  %v403_v3 = vld [vmem:[#allocation4 + $0x18] sm:$0xff]  ;;  %v404_v4 = vld [vmem:[#allocation4 + $0x20] sm:$0xff] }
  0xab   : > { %434 = vst [vmem:[#allocation2 + $0x10] sm:$0xff] %v402_v2  ;;  %v405_v5 = vld [vmem:[#allocation4 + $0x28] sm:$0xff]  ;;  %435 = vst [vmem:[#allocation2 + $0x18] sm:$0xff] %v403_v3  ;;  %v406_v6 = vld [vmem:[#allocation4 + $0x30] sm:$0xff] }
  0xac   : > { %436 = vst [vmem:[#allocation2 + $0x20] sm:$0xff] %v404_v4  ;;  %437 = vst [vmem:[#allocation2 + $0x28] sm:$0xff] %v405_v5  ;;  %v407_v7 = vld [vmem:[#allocation4 + $0x38] sm:$0xff]  ;;  %v408_v8 = vld [vmem:[#allocation4 + $0x40] sm:$0xff] }
  0xad   : > { %438 = vst [vmem:[#allocation2 + $0x30] sm:$0xff] %v406_v6  ;;  %439 = vst [vmem:[#allocation2 + $0x38] sm:$0xff] %v407_v7  ;;  %v409_v9 = vld [vmem:[#allocation4 + $0x48] sm:$0xff]  ;;  %v410_v10 = vld [vmem:[#allocation4 + $0x50] sm:$0xff] }
  0xae   : > { %440 = vst [vmem:[#allocation2 + $0x40] sm:$0xff] %v408_v8  ;;  %v411_v11 = vld [vmem:[#allocation4 + $0x58] sm:$0xff]  ;;  %441 = vst [vmem:[#allocation2 + $0x48] sm:$0xff] %v409_v9  ;;  %v412_v12 = vld [vmem:[#allocation4 + $0x60] sm:$0xff] }
  0xaf   : > { %442 = vst [vmem:[#allocation2 + $0x50] sm:$0xff] %v410_v10  ;;  %443 = vst [vmem:[#allocation2 + $0x58] sm:$0xff] %v411_v11  ;;  %v413_v13 = vld [vmem:[#allocation4 + $0x68] sm:$0xff]  ;;  %v414_v14 = vld [vmem:[#allocation4 + $0x70] sm:$0xff] }
  0xb0   : > { %444 = vst [vmem:[#allocation2 + $0x60] sm:$0xff] %v412_v12  ;;  %445 = vst [vmem:[#allocation2 + $0x68] sm:$0xff] %v413_v13  ;;  %v415_v15 = vld [vmem:[#allocation4 + $0x78] sm:$0xff]  ;;  %v416_v16 = vld [vmem:[#allocation4 + $0x80] sm:$0xff] }
  0xb1   : > { %446 = vst [vmem:[#allocation2 + $0x70] sm:$0xff] %v414_v14  ;;  %v417_v17 = vld [vmem:[#allocation4 + $0x88] sm:$0xff]  ;;  %447 = vst [vmem:[#allocation2 + $0x78] sm:$0xff] %v415_v15  ;;  %v418_v18 = vld [vmem:[#allocation4 + $0x90] sm:$0xff] }
  0xb2   : > { %448 = vst [vmem:[#allocation2 + $0x80] sm:$0xff] %v416_v16  ;;  %449 = vst [vmem:[#allocation2 + $0x88] sm:$0xff] %v417_v17  ;;  %v419_v19 = vld [vmem:[#allocation4 + $0x98] sm:$0xff]  ;;  %v420_v20 = vld [vmem:[#allocation4 + $0xa0] sm:$0xff] }
  0xb3   : > { %450 = vst [vmem:[#allocation2 + $0x90] sm:$0xff] %v418_v18  ;;  %451 = vst [vmem:[#allocation2 + $0x98] sm:$0xff] %v419_v19  ;;  %v421_v21 = vld [vmem:[#allocation4 + $0xa8] sm:$0xff]  ;;  %v422_v22 = vld [vmem:[#allocation4 + $0xb0] sm:$0xff] }
  0xb4   : > { %452 = vst [vmem:[#allocation2 + $0xa0] sm:$0xff] %v420_v20  ;;  %v423_v23 = vld [vmem:[#allocation4 + $0xb8] sm:$0xff]  ;;  %453 = vst [vmem:[#allocation2 + $0xa8] sm:$0xff] %v421_v21  ;;  %v424_v24 = vld [vmem:[#allocation4 + $0xc0] sm:$0xff] }
  0xb5   : > { %454 = vst [vmem:[#allocation2 + $0xb0] sm:$0xff] %v422_v22  ;;  %455 = vst [vmem:[#allocation2 + $0xb8] sm:$0xff] %v423_v23  ;;  %v425_v25 = vld [vmem:[#allocation4 + $0xc8] sm:$0xff]  ;;  %v426_v26 = vld [vmem:[#allocation4 + $0xd0] sm:$0xff] }
  0xb6   : > { %456 = vst [vmem:[#allocation2 + $0xc0] sm:$0xff] %v424_v24  ;;  %457 = vst [vmem:[#allocation2 + $0xc8] sm:$0xff] %v425_v25  ;;  %v427_v27 = vld [vmem:[#allocation4 + $0xd8] sm:$0xff]  ;;  %v428_v28 = vld [vmem:[#allocation4 + $0xe0] sm:$0xff] }
  0xb7   : > { %458 = vst [vmem:[#allocation2 + $0xd0] sm:$0xff] %v426_v26  ;;  %v429_v29 = vld [vmem:[#allocation4 + $0xe8] sm:$0xff]  ;;  %459 = vst [vmem:[#allocation2 + $0xd8] sm:$0xff] %v427_v27  ;;  %v430_v30 = vld [vmem:[#allocation4 + $0xf0] sm:$0xff] }
  0xb8   : > { %460 = vst [vmem:[#allocation2 + $0xe0] sm:$0xff] %v428_v28  ;;  %461 = vst [vmem:[#allocation2 + $0xe8] sm:$0xff] %v429_v29  ;;  %v431_v31 = vld [vmem:[#allocation4 + $0xf8] sm:$0xff] }
  0xb9   : > { %462 = vst [vmem:[#allocation2 + $0xf0] sm:$0xff] %v430_v30  ;;  %463 = vst [vmem:[#allocation2 + $0xf8] sm:$0xff] %v431_v31 }
  0xba PF: > { %s4803_s12 = sld [smem:[#allocation20_spill]] }
  0xc0   : > { %p2573_p2 = scmp.ne.s32.totalorder %s4803_s12, 0 }
  0xc2   : > { %466 = sbr.rel (%p2573_p2) target bundleno = 458 (0x1ca), region = 76 }
  0xc7   : > { %v3259_v32 = vld [vmem:[%s4087_s16 + $0x38] sm:$0xff]   ;;  %v3260_v33 = vld [vmem:[%s4087_s16 + $0x30] sm:$0xff]   ;;  %v3261_v34 = vld [vmem:[%s4087_s16 + $0x28] sm:$0xff]  }
  0xc8   : > { %2984 = vmatprep.subr.bf16.mxu0 %v3259_v32  ;;  %3096 = vmatprep.subr.bf16.mxu1 %v3259_v32  ;;  %v3262_v35 = vld [vmem:[%s4087_s16 + $0x20] sm:$0xff]   ;;  %v468_v37 = vld [vmem:[#allocation2 + $0x8] sm:$0xff]  ;;  %v3263_v42 = vld [vmem:[%s4087_s16 + $0x18] sm:$0xff]  }
  0xc9   : > { %2985 = vmatpush3.bf16.msra.mxu0 %v3259_v32  ;;  %3104 = vmatpush3.bf16.msra.mxu1 %v3259_v32  ;;  %v467_v36 = vld [vmem:[#allocation2] sm:$0xff]  ;;  %v484_v40 = vld [vmem:[#allocation2 + $0x88] sm:$0xff]  ;;  %v3264_v43 = vld [vmem:[%s4087_s16 + $0x10] sm:$0xff]  }
  0xca   : > { %2986 = vmatprep.subr.bf16.mxu0 %v3260_v33  ;;  %3097 = vmatprep.subr.bf16.mxu1 %v3260_v33  ;;  %v483_v38 = vld [vmem:[#allocation2 + $0x80] sm:$0xff]  ;;  %v499_v39 = vpack.c.bf16 %v468_v37, %v467_v36  ;;  %v3265_v44 = vld [vmem:[%s4087_s16 + $0x8] sm:$0xff]   ;;  %v469_v46 = vld [vmem:[#allocation2 + $0x10] sm:$0xff] }
  0xcb   : > { %v507_v41 = vpack.c.bf16 %v484_v40, %v483_v38  ;;  %v3266_v45 = vld [vmem:[%s4087_s16] sm:$0xff]   ;;  %v470_v47 = vld [vmem:[#allocation2 + $0x18] sm:$0xff]  ;;  %v485_v48 = vld [vmem:[#allocation2 + $0x90] sm:$0xff] }
  0xcc   : > { %3000 = vmatprep.mubr.bf16.mxu0 %v499_v39  ;;  %v486_v49 = vld [vmem:[#allocation2 + $0x98] sm:$0xff]  ;;  %v471_v50 = vld [vmem:[#allocation2 + $0x20] sm:$0xff]  ;;  %v472_v51 = vld [vmem:[#allocation2 + $0x28] sm:$0xff]  ;;  %v500_v54 = vpack.c.bf16 %v470_v47, %v469_v46 }
  0xcd   : > { %2987 = vmatpush3.bf16.msra.mxu0 %v3260_v33  ;;  %3105 = vmatpush3.bf16.msra.mxu1 %v3260_v33  ;;  %v487_v52 = vld [vmem:[#allocation2 + $0xa0] sm:$0xff]  ;;  %v488_v53 = vld [vmem:[#allocation2 + $0xa8] sm:$0xff]  ;;  %v508_v55 = vpack.c.bf16 %v486_v49, %v485_v48  ;;  %v501_v56 = vpack.c.bf16 %v472_v51, %v471_v50  ;;  %v473_v58 = vld [vmem:[#allocation2 + $0x30] sm:$0xff] }
  0xce   : > { %2988 = vmatprep.subr.bf16.mxu0 %v3261_v34  ;;  %3098 = vmatprep.subr.bf16.mxu1 %v3261_v34  ;;  %v509_v57 = vpack.c.bf16 %v488_v53, %v487_v52  ;;  %v474_v59 = vld [vmem:[#allocation2 + $0x38] sm:$0xff]  ;;  %v489_v60 = vld [vmem:[#allocation2 + $0xb0] sm:$0xff]  ;;  %v475_v62 = vld [vmem:[#allocation2 + $0x40] sm:$0xff] }
  0xcf   : > { %3016 = vmatprep.mubr.bf16.mxu1 %v507_v41  ;;  %v490_v61 = vld [vmem:[#allocation2 + $0xb8] sm:$0xff]  ;;  %v476_v63 = vld [vmem:[#allocation2 + $0x48] sm:$0xff]  ;;  %v491_v0 = vld [vmem:[#allocation2 + $0xc0] sm:$0xff]  ;;  %v502_v2 = vpack.c.bf16 %v474_v59, %v473_v58 }
  0xd0   : > { %v492_v1 = vld [vmem:[#allocation2 + $0xc8] sm:$0xff]  ;;  %v510_v3 = vpack.c.bf16 %v490_v61, %v489_v60  ;;  %v503_v4 = vpack.c.bf16 %v476_v63, %v475_v62  ;;  %v477_v6 = vld [vmem:[#allocation2 + $0x50] sm:$0xff]  ;;  %v478_v7 = vld [vmem:[#allocation2 + $0x58] sm:$0xff] }
  0xd1   : > { %2989 = vmatpush3.bf16.msra.mxu0 %v3261_v34  ;;  %3106 = vmatpush3.bf16.msra.mxu1 %v3261_v34  ;;  %v511_v5 = vpack.c.bf16 %v492_v1, %v491_v0  ;;  %v493_v8 = vld [vmem:[#allocation2 + $0xd0] sm:$0xff]  ;;  %v494_v9 = vld [vmem:[#allocation2 + $0xd8] sm:$0xff]  ;;  %v479_v10 = vld [vmem:[#allocation2 + $0x60] sm:$0xff]  ;;  %v504_v14 = vpack.c.bf16 %v478_v7, %v477_v6 }
  0xd2   : > { %2990 = vmatprep.subr.bf16.mxu0 %v3262_v35  ;;  %3099 = vmatprep.subr.bf16.mxu1 %v3262_v35  ;;  %v480_v11 = vld [vmem:[#allocation2 + $0x68] sm:$0xff]  ;;  %v495_v12 = vld [vmem:[#allocation2 + $0xe0] sm:$0xff]  ;;  %v512_v15 = vpack.c.bf16 %v494_v9, %v493_v8  ;;  %v481_v18 = vld [vmem:[#allocation2 + $0x70] sm:$0xff] }
  0xd3   : > { %v496_v13 = vld [vmem:[#allocation2 + $0xe8] sm:$0xff]  ;;  %v505_v16 = vpack.c.bf16 %v480_v11, %v479_v10  ;;  %v482_v19 = vld [vmem:[#allocation2 + $0x78] sm:$0xff]  ;;  %v497_v20 = vld [vmem:[#allocation2 + $0xf0] sm:$0xff] }
  0xd4   : > { %v513_v17 = vpack.c.bf16 %v496_v13, %v495_v12  ;;  %v498_v21 = vld [vmem:[#allocation2 + $0xf8] sm:$0xff]  ;;  %v506_v22 = vpack.c.bf16 %v482_v19, %v481_v18 }
  0xd5   : > { %2991 = vmatpush3.bf16.msra.mxu0 %v3262_v35  ;;  %3107 = vmatpush3.bf16.msra.mxu1 %v3262_v35  ;;  %v514_v23 = vpack.c.bf16 %v498_v21, %v497_v20 }
  0xd6   : > { %2992 = vmatprep.subr.bf16.mxu0 %v3263_v42  ;;  %3100 = vmatprep.subr.bf16.mxu1 %v3263_v42 }
  0xd9   : > { %2993 = vmatpush3.bf16.msra.mxu0 %v3263_v42  ;;  %3108 = vmatpush3.bf16.msra.mxu1 %v3263_v42 }
  0xda   : > { %2994 = vmatprep.subr.bf16.mxu0 %v3264_v43  ;;  %3101 = vmatprep.subr.bf16.mxu1 %v3264_v43 }
  0xdd   : > { %2995 = vmatpush3.bf16.msra.mxu0 %v3264_v43  ;;  %3109 = vmatpush3.bf16.msra.mxu1 %v3264_v43 }
  0xde   : > { %2996 = vmatprep.subr.bf16.mxu0 %v3265_v44  ;;  %3102 = vmatprep.subr.bf16.mxu1 %v3265_v44 }
  0xe1   : > { %2997 = vmatpush3.bf16.msra.mxu0 %v3265_v44  ;;  %3110 = vmatpush3.bf16.msra.mxu1 %v3265_v44 }
  0xe2   : > { %2998 = vmatprep.subr.bf16.mxu0 %v3266_v45  ;;  %3103 = vmatprep.subr.bf16.mxu1 %v3266_v45 }
  0xe5   : > { %2999 = vmatpush3.bf16.msra.mxu0 %v3266_v45  ;;  %3111 = vmatpush3.bf16.msra.mxu1 %v3266_v45 }
  0xe8   : > { %3001 = vmatmul.mubr.bf16.vlgmr.msra.gmra.mxu0 %v500_v54  ;;  %3017 = vmatmul.mubr.bf16.vlgmr.msra.gmra.mxu1 %v508_v55 }
  0xe9   : > { %3004 = vmatprep.mubr.bf16.mxu0 %v501_v56  ;;  %3020 = vmatprep.mubr.bf16.mxu1 %v509_v57 }
  0xf0   : > { %3005 = vmatmul.mubr.bf16.gmra.mxu0 %v502_v2  ;;  %3021 = vmatmul.mubr.bf16.gmra.mxu1 %v510_v3 }
  0xf1   : > { %3008 = vmatprep.mubr.bf16.mxu0 %v503_v4  ;;  %3024 = vmatprep.mubr.bf16.mxu1 %v511_v5 }
  0xf8   : > { %3009 = vmatmul.mubr.bf16.gmra.mxu0 %v504_v14  ;;  %3025 = vmatmul.mubr.bf16.gmra.mxu1 %v512_v15 }
  0xf9   : > { %3012 = vmatprep.mubr.bf16.mxu0 %v505_v16  ;;  %3028 = vmatprep.mubr.bf16.mxu1 %v513_v17 }
 0x100   : > { %3013 = vmatmul.mubr.bf16.gmra.mxu0 %v506_v22  ;;  %3029 = vmatmul.mubr.bf16.gmra.mxu1 %v514_v23 }
 0x1a8   : > { %v3002_v24 = vpop.f32.mrf.mxu0  ;;  %v3018_v25 = vpop.f32.mrf.mxu1 }
 0x1aa   : > { %v613_v26 = vpop.f32.mrf.mxu0  ;;  %v677_v27 = vpop.f32.mrf.mxu1 }
 0x1ac   : > { %v3003_v28 = vpop.f32.mrf.mxu0  ;;  %v3019_v29 = vpop.f32.mrf.mxu1 }
 0x1ad   : > { %v2777_v30 = vpack.c.bf16 %v3003_v28, %v3002_v24  ;;  %v2817_v31 = vpack.c.bf16 %v3019_v29, %v3018_v25 }
 0x1ae   : > { %v616_v32 = vpop.f32.mrf.mxu0  ;;  %v680_v33 = vpop.f32.mrf.mxu1 }
 0x1af   : > { %2849 = vst [vmem:[#allocation3 + $0x8] sm:$0xff] %v2777_v30   ;;  %2857 = vst [vmem:[#allocation3 + $0x48] sm:$0xff] %v2817_v31   ;;  %v2772_v34 = vpack.c.bf16 %v616_v32, %v613_v26  ;;  %v2812_v35 = vpack.c.bf16 %v680_v33, %v677_v27 }
 0x1b0   : > { %v3006_v36 = vpop.f32.mrf.mxu0  ;;  %v3022_v37 = vpop.f32.mrf.mxu1 }
 0x1b1   : > { %2773 = vst [vmem:[#allocation3] sm:$0xff] %v2772_v34   ;;  %2856 = vst [vmem:[#allocation3 + $0x40] sm:$0xff] %v2812_v35  }
 0x1b2   : > { %v629_v38 = vpop.f32.mrf.mxu0  ;;  %v693_v39 = vpop.f32.mrf.mxu1 }
 0x1b4   : > { %v3007_v40 = vpop.f32.mrf.mxu0  ;;  %v3023_v41 = vpop.f32.mrf.mxu1 }
 0x1b5   : > { %v2787_v42 = vpack.c.bf16 %v3007_v40, %v3006_v36  ;;  %v2827_v43 = vpack.c.bf16 %v3023_v41, %v3022_v37 }
 0x1b6   : > { %v632_v44 = vpop.f32.mrf.mxu0  ;;  %v696_v45 = vpop.f32.mrf.mxu1 }
 0x1b7   : > { %2851 = vst [vmem:[#allocation3 + $0x18] sm:$0xff] %v2787_v42   ;;  %2859 = vst [vmem:[#allocation3 + $0x58] sm:$0xff] %v2827_v43   ;;  %v2782_v46 = vpack.c.bf16 %v632_v44, %v629_v38  ;;  %v2822_v47 = vpack.c.bf16 %v696_v45, %v693_v39 }
 0x1b8   : > { %v3010_v48 = vpop.f32.mrf.mxu0  ;;  %v3026_v49 = vpop.f32.mrf.mxu1 }
 0x1b9   : > { %2850 = vst [vmem:[#allocation3 + $0x10] sm:$0xff] %v2782_v46   ;;  %2858 = vst [vmem:[#allocation3 + $0x50] sm:$0xff] %v2822_v47  }
 0x1ba   : > { %v645_v50 = vpop.f32.mrf.mxu0  ;;  %v709_v51 = vpop.f32.mrf.mxu1 }
 0x1bc   : > { %v3011_v52 = vpop.f32.mrf.mxu0  ;;  %v3027_v53 = vpop.f32.mrf.mxu1 }
 0x1bd   : > { %v2797_v54 = vpack.c.bf16 %v3011_v52, %v3010_v48  ;;  %v2837_v55 = vpack.c.bf16 %v3027_v53, %v3026_v49 }
 0x1be   : > { %v648_v56 = vpop.f32.mrf.mxu0  ;;  %v712_v57 = vpop.f32.mrf.mxu1 }
 0x1bf   : > { %2853 = vst [vmem:[#allocation3 + $0x28] sm:$0xff] %v2797_v54   ;;  %2861 = vst [vmem:[#allocation3 + $0x68] sm:$0xff] %v2837_v55   ;;  %v2792_v58 = vpack.c.bf16 %v648_v56, %v645_v50  ;;  %v2832_v59 = vpack.c.bf16 %v712_v57, %v709_v51 }
 0x1c0   : > { %v3014_v60 = vpop.f32.mrf.mxu0  ;;  %v3030_v61 = vpop.f32.mrf.mxu1 }
 0x1c1   : > { %2852 = vst [vmem:[#allocation3 + $0x20] sm:$0xff] %v2792_v58   ;;  %2860 = vst [vmem:[#allocation3 + $0x60] sm:$0xff] %v2832_v59  }
 0x1c2   : > { %v661_v62 = vpop.f32.mrf.mxu0  ;;  %v725_v63 = vpop.f32.mrf.mxu1 }
 0x1c4   : > { %v3015_v0 = vpop.f32.mrf.mxu0  ;;  %v3031_v1 = vpop.f32.mrf.mxu1 }
 0x1c5   : > { %v2807_v2 = vpack.c.bf16 %v3015_v0, %v3014_v60  ;;  %v2847_v3 = vpack.c.bf16 %v3031_v1, %v3030_v61 }
 0x1c6   : > { %v664_v4 = vpop.f32.mrf.mxu0  ;;  %v728_v5 = vpop.f32.mrf.mxu1 }
 0x1c7   : > { %2855 = vst [vmem:[#allocation3 + $0x38] sm:$0xff] %v2807_v2   ;;  %2863 = vst [vmem:[#allocation3 + $0x78] sm:$0xff] %v2847_v3   ;;  %v2802_v6 = vpack.c.bf16 %v664_v4, %v661_v62  ;;  %v2842_v7 = vpack.c.bf16 %v728_v5, %v725_v63 }
 0x1c9   : > { %2854 = vst [vmem:[#allocation3 + $0x30] sm:$0xff] %v2802_v6   ;;  %2862 = vst [vmem:[#allocation3 + $0x70] sm:$0xff] %v2842_v7  }
 0x1ca PF: > { %v3271_v12 = vld [vmem:[#allocation3 + $0x68] sm:$0xff]   ;;  %v3273_v14 = vld [vmem:[#allocation3 + $0x60] sm:$0xff]   ;;  %v3275_v16 = vld [vmem:[#allocation3 + $0x58] sm:$0xff]   ;;  %v3818_v63 = vmov 0   ;;  %s4804_s18 = sld [smem:[#allocation20_spill]] }
 0x1cb   : > { %v3272_v13 = vld [vmem:[#allocation3 + $0x28] sm:$0xff]   ;;  %v3274_v15 = vld [vmem:[#allocation3 + $0x20] sm:$0xff]   ;;  %v3276_v17 = vld [vmem:[#allocation3 + $0x18] sm:$0xff]   ;;  %1456 = vmatprep.mubr.bf16.mxu1 %v3818_v63  ;;  %s4813_s3 = sld [smem:[#allocation39_spill]] }
 0x1cc   : > { %v3277_v18 = vld [vmem:[#allocation3 + $0x50] sm:$0xff]   ;;  %v3285_v19 = vld [vmem:[%s4080_s22 + $0x4] ss:$8 sps:$4 sm:$0xff]   ;;  %v3283_v27 = vld [vmem:[%s4080_s22] ss:$8 sps:$4 sm:$0xff]   ;;  %s4817_s13 = sld [smem:[#allocation40_spill]] }
 0x1cd   : > { %v3278_v20 = vld [vmem:[#allocation3 + $0x10] sm:$0xff]   ;;  %1174 = vmatprep.mubr.bf16.mxu0 %v3285_v19  ;;  %v3279_v21 = vld [vmem:[#allocation3 + $0x48] sm:$0xff]   ;;  %v3281_v23 = vld [vmem:[#allocation3 + $0x40] sm:$0xff]   ;;  %s4832_s30 = sld [smem:[#allocation21_spill]] }
 0x1ce   : > { %v3267_v8 = vld [vmem:[#allocation3 + $0x78] sm:$0xff]   ;;  %v3280_v22 = vld [vmem:[#allocation3 + $0x8] sm:$0xff]   ;;  %v3282_v24 = vld [vmem:[#allocation3] sm:$0xff]  }
 0x1cf   : > { %v3268_v9 = vld [vmem:[#allocation3 + $0x38] sm:$0xff]   ;;  %2888 = vmatprep.subr.bf16.mxu0 %v3267_v8  ;;  %v3309_v26 = vld [vmem:[#allocation10 + $0xa8] ss:$12 sps:$4 sm:$0xff]   ;;  %v3317_v35 = vld [vmem:[#allocation10 + $0x64] ss:$12 sps:$4 sm:$0xff]  }
 0x1d0   : > { %v3269_v10 = vld [vmem:[#allocation3 + $0x70] sm:$0xff]   ;;  %2889 = vmatpush3.bf16.msra.mxu0 %v3268_v9  ;;  %v3307_v25 = vld [vmem:[#allocation10 + $0xac] ss:$12 sps:$4 sm:$0xff]   ;;  %v3313_v31 = vld [vmem:[#allocation10 + $0x7c] ss:$12 sps:$4 sm:$0xff]   ;;  %s2614_s20 = sshll.u32 %s4804_s18, 7 }
 0x1d1   : > { %v3270_v11 = vld [vmem:[#allocation3 + $0x30] sm:$0xff]   ;;  %2890 = vmatprep.subr.bf16.mxu0 %v3269_v10  ;;  %1424 = vmatprep.subr.bf16.mxu1 %v3307_v25  ;;  %v3320_v33 = vld [vmem:[#allocation10 + $0x98] ss:$12 sps:$4 sm:$0xff]   ;;  %v3319_v38 = vld [vmem:[#allocation10 + $0x60] ss:$12 sps:$4 sm:$0xff]   ;;  %s4135_s5 = scalar_lea.vmem [#allocation2], %s2614_s20 }
 0x1d2   : > { %v3310_v28 = vld [vmem:[#allocation10 + $0x94] ss:$12 sps:$4 sm:$0xff]   ;;  %1425 = vmatpush1.bf16.msra.mxu1 %v3309_v26  ;;  %v3312_v30 = vld [vmem:[#allocation10 + $0x90] ss:$12 sps:$4 sm:$0xff]   ;;  %v3315_v34 = vld [vmem:[#allocation10 + $0x78] ss:$12 sps:$4 sm:$0xff]  }
 0x1d3   : > { %v3286_v29 = vld [vmem:[%s4080_s22 + $0x14] ss:$8 sps:$4 sm:$0xff]   ;;  %1426 = vmatprep.subr.bf16.mxu1 %v3310_v28  ;;  %v3288_v36 = vld [vmem:[%s4080_s22 + $0x10] ss:$8 sps:$4 sm:$0xff]   ;;  %v3289_v37 = vld [vmem:[%s4080_s22 + $0x24] ss:$8 sps:$4 sm:$0xff]  }
 0x1d4   : > { %2891 = vmatpush3.bf16.msra.mxu0 %v3270_v11  ;;  %v3316_v32 = vld [vmem:[#allocation10 + $0xb0] ss:$12 sps:$4 sm:$0xff]   ;;  %v3324_v39 = vld [vmem:[#allocation10 + $0x80] ss:$12 sps:$4 sm:$0xff]   ;;  %v3328_v41 = vld [vmem:[#allocation10 + $0x68] ss:$12 sps:$4 sm:$0xff]  }
 0x1d5   : > { %2892 = vmatprep.subr.bf16.mxu0 %v3271_v12  ;;  %v3321_v40 = vld [vmem:[#allocation10 + $0x4c] ss:$12 sps:$4 sm:$0xff]   ;;  %v3323_v42 = vld [vmem:[#allocation10 + $0x48] ss:$12 sps:$4 sm:$0xff]   ;;  %v3327_v45 = vld [vmem:[#allocation10 + $0x30] ss:$12 sps:$4 sm:$0xff]  }
 0x1d6   : > { %1427 = vmatpush1.bf16.msra.mxu1 %v3312_v30  ;;  %v3325_v43 = vld [vmem:[#allocation10 + $0x34] ss:$12 sps:$4 sm:$0xff]   ;;  %v3294_v47 = vld [vmem:[%s4080_s22 + $0x30] ss:$8 sps:$4 sm:$0xff]   ;;  %v3295_v48 = vld [vmem:[%s4080_s22 + $0x44] ss:$8 sps:$4 sm:$0xff]  }
 0x1d7   : > { %1428 = vmatprep.subr.bf16.mxu1 %v3313_v31  ;;  %v3291_v44 = vld [vmem:[%s4080_s22 + $0x20] ss:$8 sps:$4 sm:$0xff]   ;;  %v3292_v46 = vld [vmem:[%s4080_s22 + $0x34] ss:$8 sps:$4 sm:$0xff]   ;;  %v3300_v51 = vld [vmem:[%s4080_s22 + $0x50] ss:$8 sps:$4 sm:$0xff]  }
 0x1d8   : > { %2893 = vmatpush3.bf16.msra.mxu0 %v3272_v13  ;;  %v3297_v49 = vld [vmem:[%s4080_s22 + $0x40] ss:$8 sps:$4 sm:$0xff]   ;;  %v3298_v50 = vld [vmem:[%s4080_s22 + $0x54] ss:$8 sps:$4 sm:$0xff]   ;;  %v3301_v52 = vld [vmem:[%s4080_s22 + $0x64] ss:$8 sps:$4 sm:$0xff]  }
 0x1d9   : > { %2894 = vmatprep.subr.bf16.mxu0 %v3273_v14  ;;  %v3303_v53 = vld [vmem:[%s4080_s22 + $0x60] ss:$8 sps:$4 sm:$0xff]   ;;  %v3304_v54 = vld [vmem:[%s4080_s22 + $0x74] ss:$8 sps:$4 sm:$0xff]   ;;  %v3306_v55 = vld [vmem:[%s4080_s22 + $0x70] ss:$8 sps:$4 sm:$0xff]  }
 0x1da   : > { %1429 = vmatpush1.bf16.msra.mxu1 %v3315_v34  ;;  %v3329_v56 = vld [vmem:[#allocation10 + $0x1c] ss:$12 sps:$4 sm:$0xff]   ;;  %v3331_v58 = vld [vmem:[#allocation10 + $0x18] ss:$12 sps:$4 sm:$0xff]   ;;  %v3335_v61 = vld [vmem:[#allocation10] ss:$12 sps:$4 sm:$0xff]  }
 0x1db   : > { %1430 = vmatprep.subr.bf16.mxu1 %v3317_v35  ;;  %v3332_v57 = vld [vmem:[#allocation10 + $0x50] ss:$12 sps:$4 sm:$0xff]   ;;  %v3336_v60 = vld [vmem:[#allocation10 + $0x38] ss:$12 sps:$4 sm:$0xff]   ;;  %v3340_v62 = vld [vmem:[#allocation10 + $0x20] ss:$12 sps:$4 sm:$0xff]  }
 0x1dc   : > { %2895 = vmatpush3.bf16.msra.mxu0 %v3274_v15  ;;  %v3333_v59 = vld [vmem:[#allocation10 + $0x4] ss:$12 sps:$4 sm:$0xff]   ;;  %v3339_v0 = vld [vmem:[#allocation12 + $0xac] ss:$12 sps:$4 sm:$0xff]   ;;  %v3341_v1 = vld [vmem:[#allocation10 + $0x8] ss:$12 sps:$4 sm:$0xff]  }
 0x1dd   : > { %2896 = vmatprep.subr.bf16.mxu0 %v3275_v16  ;;  %v3363_v2 = vld [vmem:[#allocation12 + $0xb0] ss:$12 sps:$4 sm:$0xff]   ;;  %v3337_v10 = vld [vmem:[#allocation12 + $0xa8] ss:$12 sps:$4 sm:$0xff]   ;;  %v3364_v25 = vld [vmem:[#allocation12 + $0x98] ss:$12 sps:$4 sm:$0xff]  }
 0x1de   : > { %1431 = vmatpush1.bf16.msra.mxu1 %v3319_v38  ;;  %v3344_v12 = vld [vmem:[#allocation12 + $0x94] ss:$12 sps:$4 sm:$0xff]   ;;  %v3342_v15 = vld [vmem:[#allocation12 + $0x90] ss:$12 sps:$4 sm:$0xff]   ;;  %v3353_v28 = vld [vmem:[#allocation12 + $0x4c] ss:$12 sps:$4 sm:$0xff]  }
 0x1df   : > { %1432 = vmatprep.subr.bf16.mxu1 %v3321_v40  ;;  %v3347_v16 = vld [vmem:[#allocation12 + $0x7c] ss:$12 sps:$4 sm:$0xff]   ;;  %v3365_v30 = vld [vmem:[#allocation12 + $0x80] ss:$12 sps:$4 sm:$0xff]   ;;  %p2727_p13 = scmp.ne.s32.totalorder %s4832_s30, 2 }
 0x1e0   : > { %2897 = vmatpush3.bf16.msra.mxu0 %v3276_v17  ;;  %v3351_v34 = vld [vmem:[#allocation12 + $0x48] ss:$12 sps:$4 sm:$0xff]   ;;  %v3354_v40 = vld [vmem:[#allocation12 + $0x30] ss:$12 sps:$4 sm:$0xff]  }
 0x1e1   : > { %2898 = vmatprep.subr.bf16.mxu0 %v3277_v18  ;;  %v3366_v38 = vld [vmem:[#allocation12 + $0x68] ss:$12 sps:$4 sm:$0xff]  }
 0x1e2   : > { %1433 = vmatpush1.bf16.msra.mxu1 %v3323_v42 }
 0x1e3   : > { %1434 = vmatprep.subr.bf16.mxu1 %v3325_v43  ;;  %v3367_v43 = vld [vmem:[#allocation12 + $0x50] ss:$12 sps:$4 sm:$0xff]  }
 0x1e4   : > { %2899 = vmatpush3.bf16.msra.mxu0 %v3278_v20 }
 0x1e5   : > { %2900 = vmatprep.subr.bf16.mxu0 %v3279_v21  ;;  %v3345_v21 = vld [vmem:[#allocation12 + $0x78] ss:$12 sps:$4 sm:$0xff]  }
 0x1e6   : > { %1435 = vmatpush1.bf16.msra.mxu1 %v3327_v45 }
 0x1e7   : > { %1436 = vmatprep.subr.bf16.mxu1 %v3329_v56 }
 0x1e8   : > { %2901 = vmatpush3.bf16.msra.mxu0 %v3280_v22 }
 0x1e9   : > { %2902 = vmatprep.subr.bf16.mxu0 %v3281_v23  ;;  %v3350_v23 = vld [vmem:[#allocation12 + $0x64] ss:$12 sps:$4 sm:$0xff]  }
 0x1ea   : > { %1437 = vmatpush1.bf16.msra.mxu1 %v3331_v58 }
 0x1eb   : > { %1438 = vmatprep.subr.bf16.mxu1 %v3333_v59 }
 0x1ec   : > { %2903 = vmatpush3.bf16.msra.mxu0 %v3282_v24 }
 0x1ed   : > { %3032 = vmatprep.subr.bf16.mxu0 %v3316_v32 }
 0x1ee   : > { %1439 = vmatpush1.bf16.msra.mxu1 %v3335_v61  ;;  %v3370_v61 = vld [vmem:[#allocation12 + $0x8] ss:$12 sps:$4 sm:$0xff]  }
 0x1ef   : > { %1175 = vmatmul.mubr.bf16.vlgmr.msra.gmra.mxu0 %v3283_v27  ;;  %1819 = vmatprep.subr.bf16.mxu1 %v3339_v0  ;;  %v3348_v27 = vld [vmem:[#allocation12 + $0x60] ss:$12 sps:$4 sm:$0xff]  }
 0x1f0   : > { %1182 = vmatprep.mubr.bf16.mxu0 %v3286_v29  ;;  %3033 = vmatpush3.bf16.msra.mxu0 %v3316_v32 }
 0x1f1   : > { %3034 = vmatprep.subr.bf16.mxu0 %v3320_v33 }
 0x1f4   : > { %3035 = vmatpush3.bf16.msra.mxu0 %v3320_v33 }
 0x1f5   : > { %3036 = vmatprep.subr.bf16.mxu0 %v3324_v39 }
 0x1f7   : > { %1183 = vmatmul.mubr.bf16.gmra.mxu0 %v3288_v36  ;;  %v3356_v36 = vld [vmem:[#allocation12 + $0x34] ss:$12 sps:$4 sm:$0xff]  }
 0x1f8   : > { %1190 = vmatprep.mubr.bf16.mxu0 %v3289_v37  ;;  %3037 = vmatpush3.bf16.msra.mxu0 %v3324_v39 }
 0x1f9   : > { %3038 = vmatprep.subr.bf16.mxu0 %v3328_v41 }
 0x1fc   : > { %3039 = vmatpush3.bf16.msra.mxu0 %v3328_v41  ;;  %v3359_v41 = vld [vmem:[#allocation12 + $0x1c] ss:$12 sps:$4 sm:$0xff]  }
 0x1fd   : > { %3040 = vmatprep.subr.bf16.mxu0 %v3332_v57 }
 0x1ff   : > { %1191 = vmatmul.mubr.bf16.gmra.mxu0 %v3291_v44 }
 0x200   : > { %1198 = vmatprep.mubr.bf16.mxu0 %v3292_v46  ;;  %3041 = vmatpush3.bf16.msra.mxu0 %v3332_v57 }
 0x201   : > { %3042 = vmatprep.subr.bf16.mxu0 %v3336_v60 }
 0x204   : > { %3043 = vmatpush3.bf16.msra.mxu0 %v3336_v60 }
 0x205   : > { %3044 = vmatprep.subr.bf16.mxu0 %v3340_v62 }
 0x207   : > { %1199 = vmatmul.mubr.bf16.gmra.mxu0 %v3294_v47  ;;  %v3357_v47 = vld [vmem:[#allocation12 + $0x18] ss:$12 sps:$4 sm:$0xff]  }
 0x208   : > { %1206 = vmatprep.mubr.bf16.mxu0 %v3295_v48  ;;  %3045 = vmatpush3.bf16.msra.mxu0 %v3340_v62 }
 0x209   : > { %3046 = vmatprep.subr.bf16.mxu0 %v3341_v1 }
 0x20c   : > { %3047 = vmatpush3.bf16.msra.mxu0 %v3341_v1 }
 0x20d   : > { %3064 = vmatprep.subr.bf16.mxu0 %v3363_v2 }
 0x20f   : > { %1207 = vmatmul.mubr.bf16.gmra.mxu0 %v3297_v49  ;;  %v3362_v49 = vld [vmem:[#allocation12 + $0x4] ss:$12 sps:$4 sm:$0xff]  }
 0x210   : > { %1214 = vmatprep.mubr.bf16.mxu0 %v3298_v50 }
 0x217   : > { %1215 = vmatmul.mubr.bf16.gmra.mxu0 %v3300_v51  ;;  %v3368_v51 = vld [vmem:[#allocation12 + $0x38] ss:$12 sps:$4 sm:$0xff]  }
 0x218   : > { %1222 = vmatprep.mubr.bf16.mxu0 %v3301_v52 }
 0x21f   : > { %1223 = vmatmul.mubr.bf16.gmra.mxu0 %v3303_v53  ;;  %v3360_v53 = vld [vmem:[#allocation12] ss:$12 sps:$4 sm:$0xff]  }
 0x220   : > { %1230 = vmatprep.mubr.bf16.mxu0 %v3304_v54 }
 0x227   : > { %1231 = vmatmul.mubr.bf16.gmra.mxu0 %v3306_v55  ;;  %v3369_v55 = vld [vmem:[#allocation12 + $0x20] ss:$12 sps:$4 sm:$0xff]  }
 0x2af   : > { %v2904_v3 = vpop.f32.mrf.mxu0 }
 0x2b1   : > { %v2905_v4 = vpop.f32.mrf.mxu0 }
 0x2b2   : > { %v2906_v7 = vadd.f32 %v2905_v4, %v2904_v3 }
 0x2b3   : > { %v2907_v5 = vpop.f32.mrf.mxu0 }
 0x2b5   : > { %v2908_v6 = vpop.f32.mrf.mxu0 }
 0x2b6   : > { %v2909_v8 = vadd.f32 %v2908_v6, %v2907_v5 }
 0x2b7   : > { %v2910_v9 = vpop.f32.mrf.mxu0 }
 0x2b8   : > { %v1239_v11 = vpack.c.bf16 %v2909_v8, %v2906_v7 }
 0x2b9   : > { %v2911_v13 = vpop.f32.mrf.mxu0 }
 0x2ba   : > { %1457 = vmatmul.mubr.bf16.vlgmr.msra.gmra.mxu1 %v1239_v11  ;;  %3048 = vmatprep.mubr.bf16.mxu0 %v1239_v11  ;;  %v2912_v18 = vadd.f32 %v2911_v13, %v2910_v9 }
 0x2bb   : > { %1820 = vmatpush1.bf16.msra.mxu1 %v3337_v10  ;;  %v2913_v14 = vpop.f32.mrf.mxu0  ;;  %1466 = vmatprep.mubr.bf16.mxu1 %v3818_v63 }
 0x2bc   : > { %1821 = vmatprep.subr.bf16.mxu1 %v3344_v12 }
 0x2bd   : > { %v2914_v17 = vpop.f32.mrf.mxu0 }
 0x2be   : > { %v2915_v19 = vadd.f32 %v2914_v17, %v2913_v14  ;;  %v4138_v17 = vld [vmem:[%s4135_s5] sm:$0xff] }
 0x2bf   : > { %v2916_v20 = vpop.f32.mrf.mxu0  ;;  %1822 = vmatpush1.bf16.msra.mxu1 %v3342_v15 }
 0x2c0   : > { %v1240_v22 = vpack.c.bf16 %v2915_v19, %v2912_v18  ;;  %1823 = vmatprep.subr.bf16.mxu1 %v3347_v16  ;;  %v4141_v18 = vld [vmem:[%s4135_s5 + $0x8] sm:$0xff] }
 0x2c1   : > { %v2917_v24 = vpop.f32.mrf.mxu0 }
 0x2c2   : > { %1467 = vmatmul.mubr.bf16.gmra.mxu1 %v1240_v22  ;;  %3049 = vmatmul.mubr.bf16.vlgmr.msra.gmra.mxu0 %v1240_v22  ;;  %v2918_v31 = vadd.f32 %v2917_v24, %v2916_v20  ;;  %v1634_v20 = vpack.c.bf16 %v4141_v18, %v4138_v17  ;;  %v4150_v22 = vld [vmem:[%s4135_s5 + $0x18] sm:$0xff]  ;;  %v4156_v24 = vld [vmem:[%s4135_s5 + $0x28] sm:$0xff] }
 0x2c3   : > { %v2919_v26 = vpop.f32.mrf.mxu0  ;;  %1476 = vmatprep.mubr.bf16.mxu1 %v3818_v63  ;;  %1824 = vmatpush1.bf16.msra.mxu1 %v3345_v21  ;;  %v4147_v21 = vld [vmem:[%s4135_s5 + $0x10] sm:$0xff]  ;;  %4806 = vst [vmem:[#allocation26_spill] sm:$0xff] %v4156_v24 }
 0x2c4   : > { %1825 = vmatprep.subr.bf16.mxu1 %v3350_v23  ;;  %3065 = vmatpush3.bf16.msra.mxu0 %v3363_v2  ;;  %v4153_v23 = vld [vmem:[%s4135_s5 + $0x20] sm:$0xff] }
 0x2c5   : > { %v2920_v29 = vpop.f32.mrf.mxu0  ;;  %3066 = vmatprep.subr.bf16.mxu0 %v3364_v25  ;;  %4805 = vst [vmem:[#allocation25_spill] sm:$0xff] %v4153_v23 }
 0x2c6   : > { %v2921_v32 = vadd.f32 %v2920_v29, %v2919_v26  ;;  %v1636_v26 = vpack.c.bf16 %v4156_v24, %v4153_v23  ;;  %v910_v29 = vld [vmem:[%s4135_s5 + $0x40] sm:$0xff] }
 0x2c7   : > { %v2922_v33 = vpop.f32.mrf.mxu0  ;;  %1826 = vmatpush1.bf16.msra.mxu1 %v3348_v27  ;;  %v4164_v27 = vld [vmem:[%s4135_s5 + $0x30] sm:$0xff] }
 0x2c8   : > { %v1241_v35 = vpack.c.bf16 %v2921_v32, %v2918_v31  ;;  %1827 = vmatprep.subr.bf16.mxu1 %v3353_v28  ;;  %3067 = vmatpush3.bf16.msra.mxu0 %v3364_v25  ;;  %v1635_v25 = vpack.c.bf16 %v4150_v22, %v4147_v21  ;;  %4807 = vst [vmem:[#allocation27_spill] sm:$0xff] %v4164_v27  ;;  %v4167_v28 = vld [vmem:[%s4135_s5 + $0x38] sm:$0xff] }
 0x2c9   : > { %v2923_v37 = vpop.f32.mrf.mxu0  ;;  %3068 = vmatprep.subr.bf16.mxu0 %v3365_v30  ;;  %4808 = vst [vmem:[#allocation28_spill] sm:$0xff] %v4167_v28  ;;  %v1637_v31 = vpack.c.bf16 %v4167_v28, %v4164_v27 }
 0x2ca   : > { %1477 = vmatmul.mubr.bf16.gmra.mxu1 %v1241_v35  ;;  %3052 = vmatprep.mubr.bf16.mxu0 %v1241_v35  ;;  %v2924_v44 = vadd.f32 %v2923_v37, %v2922_v33  ;;  %v912_v33 = vld [vmem:[%s4135_s5 + $0x50] sm:$0xff]  ;;  %v914_v35 = vld [vmem:[%s4135_s5 + $0x60] sm:$0xff] }
 0x2cb   : > { %v2925_v39 = vpop.f32.mrf.mxu0  ;;  %1486 = vmatprep.mubr.bf16.mxu1 %v3818_v63  ;;  %1828 = vmatpush1.bf16.msra.mxu1 %v3351_v34  ;;  %v913_v34 = vld [vmem:[%s4135_s5 + $0x58] sm:$0xff] }
 0x2cc   : > { %1829 = vmatprep.subr.bf16.mxu1 %v3356_v36  ;;  %3069 = vmatpush3.bf16.msra.mxu0 %v3365_v30  ;;  %v911_v30 = vld [vmem:[%s4135_s5 + $0x48] sm:$0xff]  ;;  %v1639_v37 = vpack.c.bf16 %v913_v34, %v912_v33 }
 0x2cd   : > { %v2926_v42 = vpop.f32.mrf.mxu0  ;;  %3070 = vmatprep.subr.bf16.mxu0 %v3366_v38  ;;  %v1638_v32 = vpack.c.bf16 %v911_v30, %v910_v29  ;;  %v915_v36 = vld [vmem:[%s4135_s5 + $0x68] sm:$0xff]  ;;  %v1279_v30 = vld [vmem:[%s4813_s3] sm:$0x7] }
 0x2ce   : > { %v2927_v45 = vadd.f32 %v2926_v42, %v2925_v39  ;;  %v916_v39 = vld [vmem:[%s4135_s5 + $0x70] sm:$0xff] }
 0x2cf   : > { %v2928_v46 = vpop.f32.mrf.mxu0  ;;  %1830 = vmatpush1.bf16.msra.mxu1 %v3354_v40  ;;  %v917_v40 = vld [vmem:[%s4135_s5 + $0x78] sm:$0xff] }
 0x2d0   : > { %v1242_v48 = vpack.c.bf16 %v2927_v45, %v2924_v44  ;;  %1831 = vmatprep.subr.bf16.mxu1 %v3359_v41  ;;  %3071 = vmatpush3.bf16.msra.mxu0 %v3366_v38  ;;  %v1640_v38 = vpack.c.bf16 %v915_v36, %v914_v35  ;;  %v1641_v41 = vpack.c.bf16 %v917_v40, %v916_v39  ;;  %v4284_v36 = vld [vmem:[%s4817_s13] sm:$0x7] }
 0x2d1   : > { %v2929_v50 = vpop.f32.mrf.mxu0  ;;  %3072 = vmatprep.subr.bf16.mxu0 %v3367_v43 }
 0x2d2   : > { %1487 = vmatmul.mubr.bf16.gmra.mxu1 %v1242_v48  ;;  %3053 = vmatmul.mubr.bf16.gmra.mxu0 %v1242_v48  ;;  %v2930_v56 = vadd.f32 %v2929_v50, %v2928_v46 }
 0x2d3   : > { %v2931_v52 = vpop.f32.mrf.mxu0  ;;  %1496 = vmatprep.mubr.bf16.mxu1 %v3818_v63  ;;  %1832 = vmatpush1.bf16.msra.mxu1 %v3357_v47 }
 0x2d4   : > { %1833 = vmatprep.subr.bf16.mxu1 %v3362_v49  ;;  %3073 = vmatpush3.bf16.msra.mxu0 %v3367_v43 }
 0x2d5   : > { %v2932_v54 = vpop.f32.mrf.mxu0  ;;  %3074 = vmatprep.subr.bf16.mxu0 %v3368_v51 }
 0x2d6   : > { %v2933_v57 = vadd.f32 %v2932_v54, %v2931_v52 }
 0x2d7   : > { %v2934_v58 = vpop.f32.mrf.mxu0  ;;  %1834 = vmatpush1.bf16.msra.mxu1 %v3360_v53 }
 0x2d8   : > { %v1243_v59 = vpack.c.bf16 %v2933_v57, %v2930_v56  ;;  %3075 = vmatpush3.bf16.msra.mxu0 %v3368_v51 }
 0x2d9   : > { %v2935_v60 = vpop.f32.mrf.mxu0  ;;  %3076 = vmatprep.subr.bf16.mxu0 %v3369_v55 }
 0x2da   : > { %1497 = vmatmul.mubr.bf16.gmra.mxu1 %v1243_v59  ;;  %3056 = vmatprep.mubr.bf16.mxu0 %v1243_v59  ;;  %v2936_v1 = vadd.f32 %v2935_v60, %v2934_v58 }
 0x2db   : > { %v2937_v62 = vpop.f32.mrf.mxu0  ;;  %1506 = vmatprep.mubr.bf16.mxu1 %v3818_v63 }
 0x2dc   : > { %3077 = vmatpush3.bf16.msra.mxu0 %v3369_v55 }
 0x2dd   : > { %v2938_v0 = vpop.f32.mrf.mxu0  ;;  %3078 = vmatprep.subr.bf16.mxu0 %v3370_v61 }
 0x2de   : > { %v2939_v2 = vadd.f32 %v2938_v0, %v2937_v62 }
 0x2df   : > { %v2940_v3 = vpop.f32.mrf.mxu0 }
 0x2e0   : > { %v1244_v4 = vpack.c.bf16 %v2939_v2, %v2936_v1  ;;  %3079 = vmatpush3.bf16.msra.mxu0 %v3370_v61 }
 0x2e1   : > { %v2941_v5 = vpop.f32.mrf.mxu0 }
 0x2e2   : > { %1507 = vmatmul.mubr.bf16.gmra.mxu1 %v1244_v4  ;;  %3057 = vmatmul.mubr.bf16.gmra.mxu0 %v1244_v4  ;;  %v2942_v8 = vadd.f32 %v2941_v5, %v2940_v3 }
 0x2e3   : > { %v2943_v6 = vpop.f32.mrf.mxu0  ;;  %1516 = vmatprep.mubr.bf16.mxu1 %v3818_v63 }
 0x2e5   : > { %v2944_v7 = vpop.f32.mrf.mxu0 }
 0x2e6   : > { %v2945_v9 = vadd.f32 %v2944_v7, %v2943_v6 }
 0x2e7   : > { %v2946_v10 = vpop.f32.mrf.mxu0 }
 0x2e8   : > { %v1245_v11 = vpack.c.bf16 %v2945_v9, %v2942_v8 }
 0x2e9   : > { %v2947_v12 = vpop.f32.mrf.mxu0 }
 0x2ea   : > { %1517 = vmatmul.mubr.bf16.gmra.mxu1 %v1245_v11  ;;  %3060 = vmatprep.mubr.bf16.mxu0 %v1245_v11  ;;  %v2948_v15 = vadd.f32 %v2947_v12, %v2946_v10  ;;  %v1281_v12 = vlaneseq }
 0x2eb   : > { %v2949_v13 = vpop.f32.mrf.mxu0  ;;  %1526 = vmatprep.mubr.bf16.mxu1 %v3818_v63 }
 0x2ed   : > { %v2950_v14 = vpop.f32.mrf.mxu0 }
 0x2ee   : > { %v2951_v16 = vadd.f32 %v2950_v14, %v2949_v13 }
 0x2f0   : > { %v1246_v19 = vpack.c.bf16 %v2951_v16, %v2948_v15  ;;  %v4259_v16 = vshrl.u32 %v1281_v12, 7 }
 0x2f2   : > { %1527 = vmatmul.mubr.bf16.gmra.mxu1 %v1246_v19  ;;  %3061 = vmatmul.mubr.bf16.gmra.mxu0 %v1246_v19  ;;  %v4757_v29 = vsub.s32 2, %v4259_v16  ;;  %v1287_v33 = vsub.s32 1, %v4259_v16 }
 0x2f3   : > { %1851 = vmatprep.mubr.bf16.mxu1 %v3818_v63  ;;  %3080 = vmatprep.mubr.bf16.mxu0 %v1634_v20 }
 0x2fa   : > { %1852 = vmatmul.mubr.bf16.vlgmr.msra.gmra.mxu1 %v1634_v20  ;;  %3081 = vmatmul.mubr.bf16.vlgmr.msra.gmra.mxu0 %v1635_v25 }
 0x2fb   : > { %1861 = vmatprep.mubr.bf16.mxu1 %v3818_v63  ;;  %3084 = vmatprep.mubr.bf16.mxu0 %v1636_v26 }
 0x302   : > { %1862 = vmatmul.mubr.bf16.gmra.mxu1 %v1635_v25  ;;  %3085 = vmatmul.mubr.bf16.gmra.mxu0 %v1637_v31 }
 0x303   : > { %1871 = vmatprep.mubr.bf16.mxu1 %v3818_v63  ;;  %3088 = vmatprep.mubr.bf16.mxu0 %v1638_v32 }
 0x30a   : > { %1872 = vmatmul.mubr.bf16.gmra.mxu1 %v1636_v26  ;;  %3089 = vmatmul.mubr.bf16.gmra.mxu0 %v1639_v37  ;;  %v1283_v26 = vsub.s32 0, %v4259_v16 }
 0x30b   : > { %1881 = vmatprep.mubr.bf16.mxu1 %v3818_v63  ;;  %3092 = vmatprep.mubr.bf16.mxu0 %v1640_v38 }
 0x312   : > { %1882 = vmatmul.mubr.bf16.gmra.mxu1 %v1637_v31  ;;  %3093 = vmatmul.mubr.bf16.gmra.mxu0 %v1641_v41 }
 0x313   : > { %1891 = vmatprep.mubr.bf16.mxu1 %v3818_v63 }
 0x31a   : > { %1892 = vmatmul.mubr.bf16.gmra.mxu1 %v1638_v32 }
 0x31b   : > { %1901 = vmatprep.mubr.bf16.mxu1 %v3818_v63 }
 0x322   : > { %1902 = vmatmul.mubr.bf16.gmra.mxu1 %v1639_v37  ;;  %v4286_v37 = vrot.slane %v1279_v30, %v1283_v26 }
 0x323   : > { %1911 = vmatprep.mubr.bf16.mxu1 %v3818_v63 }
 0x32a   : > { %1912 = vmatmul.mubr.bf16.gmra.mxu1 %v1640_v38  ;;  %v4290_v38 = vrot.slane %v1279_v30, %v4757_v29  ;;  %v4307_v29 = vrot.slane %v4284_v36, %v1287_v33 }
 0x32b   : > { %1921 = vmatprep.mubr.bf16.mxu1 %v3818_v63 }
 0x332   : > { %1922 = vmatmul.mubr.bf16.gmra.mxu1 %v1641_v41  ;;  %v4292_v41 = vrot.slane %v1279_v30, %v1287_v33 }
 0x37a   : > { %v4185_v42 = vpop.f32.mrf.mxu1 }
 0x37b   : > { %v1459_v30 = vadd.f32 %v4185_v42, %v4286_v37 }
 0x37c   : > { %v4187_v43 = vpop.f32.mrf.mxu1 }
 0x37e   : > { %v4189_v44 = vpop.f32.mrf.mxu1 }
 0x380   : > { %v4191_v45 = vpop.f32.mrf.mxu1 }
 0x381   : > { %v1465_v42 = vadd.f32 %v4191_v45, %v4292_v41 }
 0x382   : > { %v4193_v46 = vpop.f32.mrf.mxu1  ;;  %v4199_v49 = vpop.f32.mrf.mxu0 }
 0x384   : > { %v4195_v47 = vpop.f32.mrf.mxu1  ;;  %v4205_v51 = vpop.f32.mrf.mxu0 }
 0x386   : > { %v4197_v48 = vpop.f32.mrf.mxu1  ;;  %v4211_v54 = vpop.f32.mrf.mxu0 }
 0x388   : > { %v4201_v50 = vpop.f32.mrf.mxu1  ;;  %v4217_v57 = vpop.f32.mrf.mxu0 }
 0x38a   : > { %v4203_v63 = vpop.f32.mrf.mxu1 }
 0x38c   : > { %v4207_v52 = vpop.f32.mrf.mxu1 }
 0x38e   : > { %v4209_v53 = vpop.f32.mrf.mxu1 }
 0x390   : > { %v4213_v55 = vpop.f32.mrf.mxu1 }
 0x392   : > { %v4215_v56 = vpop.f32.mrf.mxu1  ;;  %v4221_v59 = vpop.f32.mrf.mxu0 }
 0x394   : > { %v4219_v58 = vpop.f32.mrf.mxu1  ;;  %v4227_v62 = vpop.f32.mrf.mxu0 }
 0x396   : > { %v4223_v60 = vpop.f32.mrf.mxu1  ;;  %v4233_v2 = vpop.f32.mrf.mxu0 }
 0x398   : > { %v4225_v61 = vpop.f32.mrf.mxu1  ;;  %v4239_v5 = vpop.f32.mrf.mxu0 }
 0x39a   : > { %v4229_v0 = vpop.f32.mrf.mxu1 }
 0x39c   : > { %v4231_v1 = vpop.f32.mrf.mxu1 }
 0x39e   : > { %v4235_v3 = vpop.f32.mrf.mxu1 }
 0x3a0   : > { %v4237_v4 = vpop.f32.mrf.mxu1 }
 0x3a2   : > { %v4241_v6 = vpop.f32.mrf.mxu1  ;;  %v4243_v7 = vpop.f32.mrf.mxu0 }
 0x3a3   : > { %4809 = vst [vmem:[#allocation29_spill] sm:$0xff] %v4243_v7 }
 0x3a4   : > { %v4245_v8 = vpop.f32.mrf.mxu1  ;;  %v4249_v10 = vpop.f32.mrf.mxu0 }
 0x3a5   : > { %4810 = vst [vmem:[#allocation30_spill] sm:$0xff] %v4249_v10 }
 0x3a6   : > { %v4247_v9 = vpop.f32.mrf.mxu1  ;;  %v4255_v14 = vpop.f32.mrf.mxu0 }
 0x3a7   : > { %4811 = vst [vmem:[#allocation31_spill] sm:$0xff] %v4255_v14 }
 0x3a8   : > { %v4251_v11 = vpop.f32.mrf.mxu1  ;;  %v4263_v20 = vpop.f32.mrf.mxu0 }
 0x3a9   : > { %4812 = vst [vmem:[#allocation32_spill] sm:$0xff] %v4263_v20 }
 0x3aa   : > { %v4253_v13 = vpop.f32.mrf.mxu1 }
 0x3ac   : > { %v4257_v15 = vpop.f32.mrf.mxu1 }
 0x3ae   : > { %v4261_v19 = vpop.f32.mrf.mxu1 }
 0x3b0   : > { %v4265_v25 = vpop.f32.mrf.mxu1 }
 0x3b2   : > { %v4272_v31 = vpop.f32.mrf.mxu1  ;;  %v4274_v32 = vpop.f32.mrf.mxu0 }
 0x3b3   : > { %4814 = vst [vmem:[#allocation33_spill] sm:$0xff] %v4274_v32 }
 0x3b4   : > { %v4277_v34 = vpop.f32.mrf.mxu1  ;;  %v4279_v35 = vpop.f32.mrf.mxu0 }
 0x3b5   : > { %4815 = vst [vmem:[#allocation34_spill] sm:$0xff] %v4277_v34  ;;  %4816 = vst [vmem:[#allocation35_spill] sm:$0xff] %v4279_v35  ;;  %v4301_v35 = vrot.slane %v4284_v36, %v1283_v26 }
 0x3b6   : > { %v1532_v39 = vpop.f32.mrf.mxu1  ;;  %v3063_v40 = vpop.f32.mrf.mxu0 }
 0x3b7   : > { %v4295_v12 = vadd.f32 %v1532_v39, %v4286_v37  ;;  %v4298_v32 = vadd.f32 %v3063_v40, %v4290_v38  ;;  %v1461_v40 = vadd.f32 %v4187_v43, %v4292_v41 }
 0x3b8   : > { %v1534_v14 = vpop.f32.mrf.mxu1 }
 0x3b9   : > { %4818 = vst [vmem:[#allocation36_spill] sm:$0xff] %v4298_v32  ;;  %v4304_v24 = vadd.f32 %v1534_v14, %v4292_v41  ;;  %v1463_v14 = vadd.f32 %v4189_v44, %v4286_v37 }
 0x3ba   : > { %v1853_v7 = vpop.f32.mrf.mxu1 }
 0x3bb   : > { %v1854_v39 = vadd.f32 %v1853_v7, %v4301_v35 }
 0x3bc   : > { %v1855_v28 = vpop.f32.mrf.mxu1 }
 0x3bd   : > { %v2029_v32 = vadd.f32 %v1854_v39, %v1459_v30  ;;  %v1856_v26 = vadd.f32 %v1855_v28, %v4307_v29  ;;  %v1469_v28 = vadd.f32 %v4193_v46, %v4286_v37 }
 0x3be   : > { %v1857_v27 = vpop.f32.mrf.mxu1 }
 0x3bf   : > { %v2695_v23 = vmul.f32 -1.442695, %v2029_v32  ;;  %v2141_v33 = vadd.f32 %v1856_v26, %v1461_v40  ;;  %v1858_v20 = vadd.f32 %v1857_v27, %v4301_v35  ;;  %v1471_v27 = vadd.f32 %v4195_v47, %v4292_v41 }
 0x3c0   : > { %v1859_v10 = vpop.f32.mrf.mxu1 }
 0x3c1   : > { %3371 = vpow2.f32 %v2695_v23  ;;  %v2711_v7 = vmul.f32 -1.442695, %v2141_v33  ;;  %v2030_v34 = vadd.f32 %v1858_v20, %v1463_v14  ;;  %v1860_v43 = vadd.f32 %v1859_v10, %v4307_v29 }
 0x3c2   : > { %v1863_v30 = vpop.f32.mrf.mxu1  ;;  %v1473_v10 = vadd.f32 %v4197_v48, %v4286_v37 }
 0x3c3   : > { %3373 = vpow2.f32 %v2711_v7  ;;  %v2696_v39 = vmul.f32 -1.442695, %v2030_v34  ;;  %v2142_v44 = vadd.f32 %v1860_v43, %v1465_v42  ;;  %v1864_v32 = vadd.f32 %v1863_v30, %v4301_v35 }
 0x3c4   : > { %v1865_v40 = vpop.f32.mrf.mxu1  ;;  %v1475_v42 = vadd.f32 %v4201_v50, %v4292_v41  ;;  %v1479_v43 = vadd.f32 %v4203_v63, %v4286_v37 }
 0x3c5   : > { %3375 = vpow2.f32 %v2696_v39  ;;  %v2712_v45 = vmul.f32 -1.442695, %v2142_v44  ;;  %v2031_v23 = vadd.f32 %v1864_v32, %v1469_v28  ;;  %v1866_v20 = vadd.f32 %v1865_v40, %v4307_v29  ;;  %v4335_v28 = vpop.f32.mrf.mxu0 }
 0x3c6   : > { %v1867_v26 = vpop.f32.mrf.mxu1 }
 0x3c7   : > { %v2697_v46 = vmul.f32 -1.442695, %v2031_v23  ;;  %v2143_v14 = vadd.f32 %v1866_v20, %v1471_v27  ;;  %v1868_v34 = vadd.f32 %v1867_v26, %v4301_v35  ;;  %3377 = vpow2.f32 %v2712_v45  ;;  %v4340_v50 = vpop.f32.mrf.mxu0 }
 0x3c8   : > { %v1869_v33 = vpop.f32.mrf.mxu1  ;;  %v1481_v27 = vadd.f32 %v4207_v52, %v4292_v41  ;;  %v1485_v52 = vadd.f32 %v4213_v55, %v4292_v41 }
 0x3c9   : > { %3379 = vpow2.f32 %v2697_v46  ;;  %v2032_v47 = vadd.f32 %v1868_v34, %v1473_v10  ;;  %v1870_v7 = vadd.f32 %v1869_v33, %v4307_v29  ;;  %v2713_v48 = vmul.f32 -1.442695, %v2143_v14 }
 0x3ca   : > { %v1873_v30 = vpop.f32.mrf.mxu1  ;;  %v1483_v33 = vadd.f32 %v4209_v53, %v4286_v37  ;;  %v1489_v53 = vadd.f32 %v4215_v56, %v4286_v37  ;;  %v4365_v56 = vadd.f32 %v4205_v51, %v4290_v38 }
 0x3cb   : > { %v2698_v39 = vmul.f32 -1.442695, %v2032_v47  ;;  %v2144_v44 = vadd.f32 %v1870_v7, %v1475_v42  ;;  %v1874_v32 = vadd.f32 %v1873_v30, %v4301_v35  ;;  %v1966_v7 = vpop.f32.mrf.mxu0 }
 0x3cc   : > { %v1875_v40 = vpop.f32.mrf.mxu1 }
 0x3cd   : > { %3381 = vpow2.f32 %v2698_v39  ;;  %v2714_v45 = vmul.f32 -1.442695, %v2144_v44  ;;  %v2033_v23 = vadd.f32 %v1874_v32, %v1479_v43  ;;  %v1876_v20 = vadd.f32 %v1875_v40, %v4307_v29 }
 0x3ce   : > { %v3372_v63 = vpop.eup %3371  ;;  %v1877_v26 = vpop.f32.mrf.mxu1  ;;  %3383 = vpow2.f32 %v2713_v48 }
 0x3cf   : > { %v2093_v10 = vadd.f32 1.0, %v3372_v63  ;;  %v2699_v46 = vmul.f32 -1.442695, %v2033_v23  ;;  %v2145_v14 = vadd.f32 %v1876_v20, %v1481_v27  ;;  %3385 = vpow2.f32 %v2714_v45 }
 0x3d0   : > { %v3374_v34 = vpop.eup %3373  ;;  %v1878_v42 = vadd.f32 %v1877_v26, %v4301_v35  ;;  %v1879_v47 = vpop.f32.mrf.mxu1  ;;  %v4354_v45 = vadd.f32 %v4199_v49, %v4290_v38  ;;  %v4819_v63 = vsub.s32 2, %v4259_v16  ;;  %v1493_v16 = vadd.f32 %v4223_v60, %v4286_v37 }
 0x3d1   : > { %3387 = vrcp.f32 %v2093_v10  ;;  %v2205_v43 = vadd.f32 1.0, %v3374_v34  ;;  %v2715_v30 = vmul.f32 -1.442695, %v2145_v14  ;;  %v1880_v39 = vadd.f32 %v1879_v47, %v4307_v29  ;;  %v4361_v10 = vpop.f32.mrf.mxu0 }
 0x3d2   : > { %v3376_v48 = vpop.eup %3375  ;;  %3389 = vpow2.f32 %v2699_v46  ;;  %v2034_v44 = vadd.f32 %v1878_v42, %v1483_v33  ;;  %v1883_v32 = vpop.f32.mrf.mxu1  ;;  %v4359_v26 = vrot.slane %v4284_v36, %v4819_v63  ;;  %v1491_v33 = vadd.f32 %v4219_v58, %v4292_v41 }
 0x3d3   : > { %v2094_v27 = vadd.f32 1.0, %v3376_v48  ;;  %v2146_v40 = vadd.f32 %v1880_v39, %v1485_v52  ;;  %v1884_v55 = vadd.f32 %v1883_v32, %v4301_v35  ;;  %3391 = vpow2.f32 %v2715_v30  ;;  %v4377_v48 = vpop.f32.mrf.mxu0 }
 0x3d4   : > { %v2700_v23 = vmul.f32 -1.442695, %v2034_v44  ;;  %v1885_v20 = vpop.f32.mrf.mxu1  ;;  %v3378_v46 = vpop.eup %3377  ;;  %3393 = vrcp.f32 %v2205_v43  ;;  %v4375_v43 = vadd.f32 %v4211_v54, %v4290_v38  ;;  %v1495_v60 = vadd.f32 %v4225_v61, %v4292_v41 }
 0x3d5   : > { %v2716_v14 = vmul.f32 -1.442695, %v2146_v40  ;;  %v2035_v34 = vadd.f32 %v1884_v55, %v1489_v53  ;;  %v1886_v36 = vadd.f32 %v1885_v20, %v4307_v29  ;;  %v2206_v30 = vadd.f32 1.0, %v3378_v46 }
 0x3d6   : > { %v3380_v49 = vpop.eup %3379  ;;  %3395 = vpow2.f32 %v2700_v23  ;;  %v1887_v52 = vpop.f32.mrf.mxu1  ;;  %v4388_v54 = vadd.f32 %v4221_v59, %v4290_v38  ;;  %v1967_v55 = vadd.f32 %v1966_v7, %v4359_v26  ;;  %v4402_v7 = vadd.f32 %v4233_v2, %v4290_v38 }
 0x3d7   : > { %3397 = vrcp.f32 %v2094_v27  ;;  %v2095_v42 = vadd.f32 1.0, %v3380_v49  ;;  %v2701_v47 = vmul.f32 -1.442695, %v2035_v34  ;;  %v1888_v51 = vadd.f32 %v1887_v52, %v4301_v35  ;;  %v4391_v23 = vpop.f32.mrf.mxu0 }
 0x3d8   : > { %3399 = vpow2.f32 %v2716_v14  ;;  %v2147_v39 = vadd.f32 %v1886_v36, %v1491_v33  ;;  %v1889_v58 = vpop.f32.mrf.mxu1  ;;  %v4384_v27 = vadd.f32 %v4217_v57, %v4290_v38  ;;  %v4395_v34 = vadd.f32 %v4227_v62, %v4290_v38 }
 0x3d9   : > { %3401 = vrcp.f32 %v2095_v42  ;;  %v2036_v44 = vadd.f32 %v1888_v51, %v1493_v16  ;;  %v1890_v32 = vadd.f32 %v1889_v58, %v4307_v29  ;;  %v1499_v57 = vadd.f32 %v4229_v0, %v4286_v37  ;;  %v4412_v51 = vpop.f32.mrf.mxu0 }
 0x3da   : > { %v3382_v53 = vpop.eup %3381  ;;  %3403 = vpow2.f32 %v2701_v47  ;;  %v1893_v40 = vpop.f32.mrf.mxu1  ;;  %v2717_v20 = vmul.f32 -1.442695, %v2147_v39  ;;  %v4406_v16 = vadd.f32 %v4239_v5, %v4290_v38  ;;  %v1501_v52 = vadd.f32 %v4231_v1, %v4292_v41 }
 0x3db   : > { %v2096_v61 = vadd.f32 1.0, %v3382_v53  ;;  %v2702_v63 = vmul.f32 -1.442695, %v2036_v44  ;;  %v2148_v46 = vadd.f32 %v1890_v32, %v1495_v60  ;;  %v3384_v14 = vpop.eup %3383  ;;  %3405 = vrcp.f32 %v2206_v30 }
 0x3dc   : > { %v1894_v59 = vadd.f32 %v1893_v40, %v4301_v35  ;;  %v1895_v49 = vpop.f32.mrf.mxu1  ;;  %v3386_v33 = vpop.eup %3385  ;;  %v1503_v0 = vadd.f32 %v4235_v3, %v4286_v37  ;;  %v1505_v30 = vadd.f32 %v4237_v4, %v4292_v41  ;;  %v2207_v58 = vadd.f32 1.0, %v3384_v14 }
 0x3dd   : > { %3407 = vrcp.f32 %v2096_v61  ;;  %v2718_v36 = vmul.f32 -1.442695, %v2148_v46  ;;  %v1896_v1 = vadd.f32 %v1895_v49, %v4307_v29  ;;  %v1509_v53 = vadd.f32 %v4241_v6, %v4286_v37  ;;  %v4430_v14 = vpop.f32.mrf.mxu0 }
 0x3de   : > { %v3388_v62 = vpop.eup %3387  ;;  %3409 = vpow2.f32 %v2702_v63  ;;  %v2037_v42 = vadd.f32 %v1894_v59, %v1499_v57  ;;  %v1897_v47 = vpop.f32.mrf.mxu1  ;;  %v4422_v40 = vadd.f32 %v4245_v8, %v4292_v41  ;;  %v2208_v61 = vadd.f32 1.0, %v3386_v33 }
 0x3df   : > { %v3390_v2 = vpop.eup %3389  ;;  %3411 = vpow2.f32 %v2717_v20  ;;  %v2253_v5 = vmul.f32 %v3388_v62, %v1967_v55  ;;  %v1898_v39 = vadd.f32 %v1897_v47, %v4301_v35  ;;  %v4428_v55 = vadd.f32 %v4247_v9, %v4286_v37 }
 0x3e0   : > { %v2097_v60 = vadd.f32 1.0, %v3390_v2  ;;  %v2703_v44 = vmul.f32 -1.442695, %v2037_v42  ;;  %v1899_v32 = vpop.f32.mrf.mxu1  ;;  %v3392_v3 = vpop.eup %3391  ;;  %3413 = vpow2.f32 %v2718_v36  ;;  %v4434_v6 = vadd.f32 %v4251_v11, %v4292_v41 }
 0x3e1   : > { %v4424_v4 = vpop.eup %3393  ;;  %v2209_v20 = vadd.f32 1.0, %v3392_v3  ;;  %v2038_v63 = vadd.f32 %v1898_v39, %v1503_v0  ;;  %v1975_v8 = vadd.f32 %v4340_v50, %v4359_v26  ;;  %v2269_v59 = vadd.f32 %v2253_v5, %v4365_v56 }
 0x3e2   : > { %3415 = vrcp.f32 %v2097_v60  ;;  %v1903_v46 = vpop.f32.mrf.mxu1  ;;  %v2149_v33 = vadd.f32 %v1896_v1, %v1501_v52  ;;  %v1900_v36 = vadd.f32 %v1899_v32, %v4307_v29  ;;  %v4442_v42 = vadd.f32 %v4253_v13, %v4286_v37  ;;  %v1985_v13 = vpop.f32.mrf.mxu0 }
 0x3e3   : > { %v3396_v57 = vpop.eup %3395  ;;  %3417 = vpow2.f32 %v2703_v44  ;;  %v2704_v11 = vmul.f32 -1.442695, %v2038_v63  ;;  %v1970_v47 = vadd.f32 %v4377_v48, %v4359_v26  ;;  %v4448_v56 = vadd.f32 %v4257_v15, %v4292_v41 }
 0x3e4   : > { %v3398_v49 = vpop.eup %3397  ;;  %3419 = vrcp.f32 %v2207_v58  ;;  %v2098_v9 = vadd.f32 1.0, %v3396_v57  ;;  %v1905_v62 = vpop.f32.mrf.mxu1  ;;  %v4452_v52 = vadd.f32 %v4261_v19, %v4286_v37  ;;  %v1904_v2 = vadd.f32 %v1903_v46, %v4301_v35 }
 0x3e5   : > { %v3400_v0 = vpop.eup %3399  ;;  %3421 = vrcp.f32 %v2208_v61  ;;  %v4457_v58 = vadd.f32 %v4265_v25, %v4292_v41  ;;  %v1978_v15 = vadd.f32 %v4361_v10, %v4359_v26  ;;  %v2719_v44 = vmul.f32 -1.442695, %v2149_v33  ;;  %v4461_v32 = vpop.f32.mrf.mxu0 }
 0x3e6   : > { %v3402_v50 = vpop.eup %3401  ;;  %3423 = vrcp.f32 %v2209_v20  ;;  %v1907_v5 = vpop.f32.mrf.mxu1  ;;  %v2150_v19 = vadd.f32 %v1900_v36, %v1505_v30  ;;  %v2210_v61 = vadd.f32 1.0, %v3400_v0  ;;  %v2254_v25 = vmul.f32 %v3398_v49, %v1970_v47 }
 0x3e7   : > { %v3404_v39 = vpop.eup %3403  ;;  %v2255_v48 = vmul.f32 %v3402_v50, %v1975_v8  ;;  %3425 = vtanh.f32 %v2269_v59  ;;  %v4468_v46 = vadd.f32 %v4272_v31, %v4286_v37  ;;  %v2039_v10 = vadd.f32 %v1904_v2, %v1509_v53  ;;  %v1998_v36 = vpop.f32.mrf.mxu0 }
 0x3e8   : > { %3427 = vrcp.f32 %v2098_v9  ;;  %v2099_v60 = vadd.f32 1.0, %v3404_v39  ;;  %v1909_v1 = vpop.f32.mrf.mxu1  ;;  %v4463_v3 = vpop.eup %3405  ;;  %v1908_v57 = vadd.f32 %v1907_v5, %v4301_v35  ;;  %v4473_v9 = vadd.f32 %v4391_v23, %v4359_v26 }
 0x3e9   : > { %v2271_v20 = vadd.f32 %v2255_v48, %v4354_v45  ;;  %3429 = vpow2.f32 %v2704_v11  ;;  %v1983_v45 = vadd.f32 %v4412_v51, %v4359_v26  ;;  %v2720_v31 = vmul.f32 -1.442695, %v2150_v19 }
 0x3ea   : > { %v3408_v63 = vpop.eup %3407  ;;  %3431 = vrcp.f32 %v2099_v60  ;;  %v1913_v30 = vpop.f32.mrf.mxu1  ;;  %v2270_v11 = vadd.f32 %v2254_v25, %v4384_v27  ;;  %v1906_v47 = vadd.f32 %v1905_v62, %v4307_v29  ;;  %v2705_v50 = vmul.f32 -1.442695, %v2039_v10 }
 0x3eb   : > { %v3410_v8 = vpop.eup %3409  ;;  %3433 = vtanh.f32 %v2271_v20  ;;  %v2256_v59 = vmul.f32 %v3408_v63, %v1978_v15  ;;  %v1914_v37 = vadd.f32 %v1913_v30, %v4301_v35  ;;  %v2040_v51 = vadd.f32 %v1908_v57, %v4428_v55 }
 0x3ec   : > { %v3412_v49 = vpop.eup %3411  ;;  %v2100_v33 = vadd.f32 1.0, %v3410_v8  ;;  %3435 = vpow2.f32 %v2719_v44  ;;  %v1915_v53 = vpop.f32.mrf.mxu1  ;;  %v4484_v5 = vadd.f32 %v4430_v14, %v4359_v26  ;;  %v1986_v15 = vadd.f32 %v1985_v13, %v4359_v26 }
 0x3ed   : > { %3437 = vrcp.f32 %v2210_v61  ;;  %v2272_v0 = vadd.f32 %v2256_v59, %v4375_v43  ;;  %v3414_v23 = vpop.eup %3413  ;;  %v2211_v48 = vadd.f32 1.0, %v3412_v49  ;;  %v4488_v43 = vadd.f32 %v1998_v36, %v4359_v26 }
 0x3ee   : > { %3439 = vrcp.f32 %v2100_v33  ;;  %v1917_v2 = vpop.f32.mrf.mxu1  ;;  %v2333_v62 = vmul.f32 %v4424_v4, %v4138_v17  ;;  %v1910_v55 = vadd.f32 %v1909_v1, %v4307_v29  ;;  %v2041_v60 = vadd.f32 %v1914_v37, %v4442_v42 }
 0x3ef   : > { %v3416_v39 = vpop.eup %3415  ;;  %3441 = vtanh.f32 %v2272_v0  ;;  %v2212_v19 = vadd.f32 1.0, %v3414_v23  ;;  %v2151_v20 = vadd.f32 %v1906_v47, %v4422_v40  ;;  %v2706_v25 = vmul.f32 -1.442695, %v2040_v51 }
 0x3f0   : > { %v3418_v27 = vpop.eup %3417  ;;  %3443 = vpow2.f32 %v2720_v31  ;;  %v1919_v44 = vpop.f32.mrf.mxu1  ;;  %v1916_v63 = vadd.f32 %v1915_v53, %v4307_v29  ;;  %v1918_v17 = vadd.f32 %v1917_v2, %v4301_v35  ;;  %v4503_v42 = vmul.f32 %v4463_v3, %v4141_v18 }
 0x3f1   : > { %v3420_v14 = vpop.eup %3419  ;;  %v2101_v61 = vadd.f32 1.0, %v3418_v27  ;;  %3445 = vtanh.f32 %v2270_v11  ;;  %v2301_v1 = vsub.f32 1.0, %v4424_v4  ;;  %v2257_v30 = vmul.f32 %v3416_v39, %v1983_v45 }
 0x3f2   : > { %v4495_v13 = vpop.eup %3421  ;;  %3447 = vpow2.f32 %v2705_v50  ;;  %v1923_v10 = vpop.f32.mrf.mxu1  ;;  %v2302_v8 = vsub.f32 1.0, %v4463_v3  ;;  %v2152_v59 = vadd.f32 %v1910_v55, %v4434_v6  ;;  %v2707_v49 = vmul.f32 -1.442695, %v2041_v60 }
 0x3f3   : > { %v4499_v57 = vpop.eup %3423  ;;  %3449 = vrcp.f32 %v2211_v48  ;;  %v2335_v37 = vmul.f32 %v3420_v14, %v4147_v21  ;;  %v2303_v53 = vsub.f32 1.0, %v3420_v14  ;;  %v2721_v0 = vmul.f32 -1.442695, %v2151_v20 }
 0x3f4   : > { %v3426_v40 = vpop.eup %3425  ;;  %3451 = vrcp.f32 %v2101_v61  ;;  %v1925_v33 = vpop.f32.mrf.mxu1  ;;  %v2153_v4 = vadd.f32 %v1916_v63, %v4448_v56  ;;  %v2042_v45 = vadd.f32 %v1918_v17, %v4452_v52  ;;  %v2273_v23 = vadd.f32 %v2257_v30, %v4395_v34 }
 0x3f5   : > { %v3428_v31 = vpop.eup %3427  ;;  %3453 = vrcp.f32 %v2212_v19  ;;  %v2317_v36 = vmul.f32 %v3426_v40, %v2301_v1  ;;  %v1924_v21 = vadd.f32 %v1923_v10, %v4301_v35  ;;  %v2304_v51 = vsub.f32 1.0, %v4495_v13  ;;  %v4531_v63 = vpop.f32.mrf.mxu0 }
 0x3f6   : > { %v3430_v18 = vpop.eup %3429  ;;  %3455 = vpow2.f32 %v2706_v25  ;;  %v1927_v11 = vpop.f32.mrf.mxu1  ;;  %v2722_v2 = vmul.f32 -1.442695, %v2152_v59  ;;  %v2258_v52 = vmul.f32 %v3428_v31, %v1986_v15  ;;  %v2708_v55 = vmul.f32 -1.442695, %v2042_v45 }
 0x3f7   : > { %v3432_v3 = vpop.eup %3431  ;;  %v4511_v47 = vadd.f32 %v2333_v62, %v2317_v36  ;;  %v2102_v6 = vadd.f32 1.0, %v3430_v18  ;;  %3457 = vpow2.f32 %v2707_v49  ;;  %v1928_v27 = vadd.f32 %v1927_v11, %v4301_v35 }
 0x3f8   : > { %v3434_v50 = vpop.eup %3433  ;;  %v2259_v39 = vmul.f32 %v3432_v3, %v4473_v9  ;;  %v1920_v60 = vadd.f32 %v1919_v44, %v4307_v29  ;;  %v1929_v14 = vpop.f32.mrf.mxu1  ;;  %v2723_v61 = vmul.f32 -1.442695, %v2153_v4  ;;  %v2043_v20 = vadd.f32 %v1924_v21, %v4468_v46  ;;  %v4822_v21 = vld [vmem:[#allocation32_spill] sm:$0xff] }
 0x3f9   : > { %v3436_v48 = vpop.eup %3435  ;;  %v2319_v56 = vmul.f32 %v3434_v50, %v2303_v53  ;;  %2365 = vst [vmem:[%s4135_s5] sm:$0xff] %v4511_v47  ;;  %3459 = vrcp.f32 %v2102_v6  ;;  %v2336_v35 = vmul.f32 %v4495_v13, %v4150_v22  ;;  %v2274_v10 = vadd.f32 %v2258_v52, %v4406_v16  ;;  %v4821_v6 = vld [vmem:[#allocation30_spill] sm:$0xff] }
 0x3fa   : > { %v4520_v62 = vpop.eup %3437  ;;  %3461 = vpow2.f32 %v2721_v0  ;;  %v2275_v34 = vadd.f32 %v2259_v39, %v4388_v54  ;;  %v2044_v54 = vadd.f32 %v1928_v27, %v4295_v12  ;;  %v1930_v46 = vadd.f32 %v1929_v14, %v4307_v29 }
 0x3fb   : > { %v3440_v19 = vpop.eup %3439  ;;  %v4524_v9 = vadd.f32 %v2335_v37, %v2319_v56  ;;  %3463 = vtanh.f32 %v2273_v23  ;;  %v1926_v12 = vadd.f32 %v1925_v33, %v4307_v29  ;;  %v2709_v59 = vmul.f32 -1.442695, %v2043_v20 }
 0x3fc   : > { %v3442_v15 = vpop.eup %3441  ;;  %3465 = vtanh.f32 %v2275_v34  ;;  %v2260_v25 = vmul.f32 %v3440_v19, %v4484_v5  ;;  %v2154_v5 = vadd.f32 %v1920_v60, %v4457_v58  ;;  %v2213_v16 = vadd.f32 1.0, %v3436_v48  ;;  %v4820_v58 = vld [vmem:[#allocation34_spill] sm:$0xff]  ;;  %v4823_v60 = vld [vmem:[#allocation25_spill] sm:$0xff] }
 0x3fd   : > { %v3444_v44 = vpop.eup %3443  ;;  %2367 = vst [vmem:[%s4135_s5 + $0x10] sm:$0xff] %v4524_v9  ;;  %v2320_v17 = vmul.f32 %v3442_v15, %v2304_v51  ;;  %3467 = vpow2.f32 %v2722_v2  ;;  %v4543_v37 = vadd.f32 %v1930_v46, %v4304_v24  ;;  %v1531_v36 = vadd.f32 %v4820_v58, %v4292_v41  ;;  %v4824_v15 = vld [vmem:[#allocation27_spill] sm:$0xff] }
 0x3fe   : > { %v3446_v1 = vpop.eup %3445  ;;  %3469 = vpow2.f32 %v2708_v55  ;;  %v2276_v22 = vadd.f32 %v2260_v25, %v4402_v7  ;;  %v2001_v7 = vpop.f32.mrf.mxu0  ;;  %v2214_v29 = vadd.f32 1.0, %v3444_v44  ;;  %v2724_v0 = vmul.f32 -1.442695, %v2154_v5 }
 0x3ff   : > { %v3448_v13 = vpop.eup %3447  ;;  %v4540_v30 = vadd.f32 %v2336_v35, %v2320_v17  ;;  %v2318_v40 = vmul.f32 %v3446_v1, %v2302_v8  ;;  %3471 = vpow2.f32 %v2723_v61  ;;  %v2155_v24 = vadd.f32 %v1926_v12, %v1531_v36  ;;  %v4827_v36 = vld [vmem:[#allocation26_spill] sm:$0xff] }
 0x400   : > { %v3450_v49 = vpop.eup %3449  ;;  %v2103_v31 = vadd.f32 1.0, %v3448_v13  ;;  %3473 = vtanh.f32 %v2276_v22  ;;  %v2002_v4 = vadd.f32 %v2001_v7, %v4359_v26  ;;  %v2710_v3 = vmul.f32 -1.442695, %v2044_v54  ;;  %v4561_v34 = vpop.f32.mrf.mxu0 }
 0x401   : > { %v3452_v53 = vpop.eup %3451  ;;  %2368 = vst [vmem:[%s4135_s5 + $0x18] sm:$0xff] %v4540_v30  ;;  %v4550_v8 = vadd.f32 %v4503_v42, %v2318_v40  ;;  %3475 = vtanh.f32 %v2274_v10  ;;  %v1604_v23 = vadd.f32 %v4821_v6, %v4290_v38  ;;  %v1607_v50 = vadd.f32 %v4822_v21, %v4290_v38  ;;  %v4828_v21 = vld [vmem:[#allocation31_spill] sm:$0xff] }
 0x402   : > { %v3454_v33 = vpop.eup %3453  ;;  %3477 = vrcp.f32 %v2103_v31  ;;  %v2261_v41 = vmul.f32 %v3452_v53, %v4488_v43  ;;  %v2305_v39 = vsub.f32 1.0, %v4499_v57  ;;  %v2725_v48 = vmul.f32 -1.442695, %v2155_v24  ;;  %v2014_v5 = vpop.f32.mrf.mxu0  ;;  %v4826_v53 = vld [vmem:[#allocation29_spill] sm:$0xff] }
 0x403   : > { %v3456_v18 = vpop.eup %3455  ;;  %2366 = vst [vmem:[%s4135_s5 + $0x8] sm:$0xff] %v4550_v8  ;;  %3479 = vpow2.f32 %v2709_v59  ;;  %v2307_v43 = vsub.f32 1.0, %v3450_v49  ;;  %v2337_v14 = vmul.f32 %v4499_v57, %v4823_v60  ;;  %v2339_v35 = vmul.f32 %v3450_v49, %v4824_v15  ;;  %v4825_v49 = vld [vmem:[#allocation28_spill] sm:$0xff] }
 0x404   : > { %3481 = vrcp.f32 %v2213_v16  ;;  %v2104_v45 = vadd.f32 1.0, %v3456_v18  ;;  %v3458_v11 = vpop.eup %3457  ;;  %v2277_v27 = vadd.f32 %v2261_v41, %v1604_v23  ;;  %v2308_v17 = vsub.f32 1.0, %v3454_v33 }
 0x405   : > { %3483 = vrcp.f32 %v2214_v29  ;;  %v2105_v51 = vadd.f32 1.0, %v3458_v11  ;;  %v2007_v10 = vadd.f32 %v4461_v32, %v4359_v26  ;;  %v2306_v40 = vsub.f32 1.0, %v4520_v62 }
 0x406   : > { %v3460_v42 = vpop.eup %3459  ;;  %3485 = vrcp.f32 %v2104_v45  ;;  %v2340_v16 = vmul.f32 %v3454_v33, %v4825_v49  ;;  %v2726_v31 = vmul.f32 -1.442695, %v4543_v37  ;;  %v1612_v58 = vadd.f32 %v4826_v53, %v4290_v38  ;;  %v4587_v45 = vpop.f32.mrf.mxu0 }
 0x407   : > { %v3462_v2 = vpop.eup %3461  ;;  %3487 = vpow2.f32 %v2724_v0  ;;  %v2262_v56 = vmul.f32 %v3460_v42, %v2002_v4  ;;  %v2338_v29 = vmul.f32 %v4520_v62, %v4827_v36  ;;  %v2010_v4 = vadd.f32 %v4531_v63, %v4359_v26 }
 0x408   : > { %v3464_v52 = vpop.eup %3463  ;;  %3489 = vrcp.f32 %v2105_v51  ;;  %v2215_v1 = vadd.f32 1.0, %v3462_v2  ;;  %v2015_v6 = vadd.f32 %v2014_v5, %v4359_v26  ;;  %v2017_v2 = vpop.f32.mrf.mxu0  ;;  %v2023_v53 = vadd.f32 %v4561_v34, %v4359_v26 }
 0x409   : > { %v3466_v55 = vpop.eup %3465  ;;  %v2321_v19 = vmul.f32 %v3464_v52, %v2305_v39  ;;  %3491 = vpow2.f32 %v2710_v3  ;;  %v2278_v61 = vadd.f32 %v2262_v56, %v1607_v50  ;;  %v1615_v50 = vadd.f32 %v4828_v21, %v4290_v38  ;;  %v4829_v56 = vld [vmem:[#allocation35_spill] sm:$0xff] }
 0x40a   : > { %v3468_v20 = vpop.eup %3467  ;;  %v2323_v25 = vmul.f32 %v3466_v55, %v2307_v43  ;;  %3493 = vpow2.f32 %v2725_v48  ;;  %v1620_v52 = vadd.f32 %v4829_v56, %v4290_v38  ;;  %v2018_v60 = vadd.f32 %v2017_v2, %v4359_v26 }
 0x40b   : > { %v3470_v54 = vpop.eup %3469  ;;  %v4566_v44 = vadd.f32 %v2337_v14, %v2321_v19  ;;  %3495 = vtanh.f32 %v2277_v27  ;;  %v2216_v13 = vadd.f32 1.0, %v3468_v20 }
 0x40c   : > { %v3472_v46 = vpop.eup %3471  ;;  %v4570_v57 = vadd.f32 %v2339_v35, %v2323_v25  ;;  %v2106_v22 = vadd.f32 1.0, %v3470_v54  ;;  %3497 = vtanh.f32 %v2278_v61  ;;  %v3531_v54 = vld [vmem:[%s4135_s5 + $0x40] sm:$0xff] }
 0x40d   : > { %v3474_v12 = vpop.eup %3473  ;;  %2369 = vst [vmem:[%s4135_s5 + $0x20] sm:$0xff] %v4566_v44  ;;  %v2217_v42 = vadd.f32 1.0, %v3472_v46 }
 0x40e   : > { %v3476_v59 = vpop.eup %3475  ;;  %2371 = vst [vmem:[%s4135_s5 + $0x30] sm:$0xff] %v4570_v57  ;;  %3499 = vrcp.f32 %v2106_v22  ;;  %v2324_v32 = vmul.f32 %v3474_v12, %v2308_v17  ;;  %v1623_v12 = vadd.f32 %v4335_v28, %v4290_v38 }
 0x40f   : > { %v3478_v7 = vpop.eup %3477  ;;  %v2322_v18 = vmul.f32 %v3476_v59, %v2306_v40  ;;  %3501 = vrcp.f32 %v2215_v1  ;;  %v3532_v1 = vld [vmem:[%s4135_s5 + $0x48] sm:$0xff] }
 0x410   : > { %v3480_v0 = vpop.eup %3479  ;;  %v4583_v24 = vadd.f32 %v2340_v16, %v2324_v32  ;;  %v2263_v33 = vmul.f32 %v3478_v7, %v2007_v10  ;;  %3503 = vrcp.f32 %v2216_v13 }
 0x411   : > { %v3482_v37 = vpop.eup %3481  ;;  %v4589_v41 = vadd.f32 %v2338_v29, %v2322_v18  ;;  %v2107_v11 = vadd.f32 1.0, %v3480_v0  ;;  %3505 = vpow2.f32 %v2726_v31  ;;  %v4830_v29 = vld [vmem:[#allocation33_spill] sm:$0xff] }
 0x412   : > { %v3484_v3 = vpop.eup %3483  ;;  %2372 = vst [vmem:[%s4135_s5 + $0x38] sm:$0xff] %v4583_v24  ;;  %v2279_v62 = vadd.f32 %v2263_v33, %v1612_v58  ;;  %v2309_v61 = vsub.f32 1.0, %v3482_v37  ;;  %v2341_v17 = vmul.f32 %v3531_v54, %v3482_v37  ;;  %v1628_v18 = vadd.f32 %v4830_v29, %v4290_v38  ;;  %v3533_v33 = vld [vmem:[%s4135_s5 + $0x50] sm:$0xff]  ;;  %v3534_v38 = vld [vmem:[%s4135_s5 + $0x58] sm:$0xff] }
 0x413   : > { %v3486_v23 = vpop.eup %3485  ;;  %2370 = vst [vmem:[%s4135_s5 + $0x28] sm:$0xff] %v4589_v41  ;;  %3507 = vrcp.f32 %v2107_v11  ;;  %v2310_v35 = vsub.f32 1.0, %v3484_v3  ;;  %v2342_v22 = vmul.f32 %v3532_v1, %v3484_v3 }
 0x414   : > { %v3488_v63 = vpop.eup %3487  ;;  %3509 = vtanh.f32 %v2279_v62  ;;  %v2264_v51 = vmul.f32 %v3486_v23, %v2010_v4  ;;  %v2026_v23 = vadd.f32 %v4587_v45, %v4359_v26 }
 0x415   : > { %v3490_v39 = vpop.eup %3489  ;;  %3511 = vrcp.f32 %v2217_v42  ;;  %v2218_v19 = vadd.f32 1.0, %v3488_v63 }
 0x416   : > { %v3492_v48 = vpop.eup %3491  ;;  %v2280_v43 = vadd.f32 %v2264_v51, %v1615_v50  ;;  %v2265_v27 = vmul.f32 %v3490_v39, %v2015_v6 }
 0x417   : > { %v2108_v55 = vadd.f32 1.0, %v3492_v48  ;;  %v3494_v14 = vpop.eup %3493  ;;  %v3535_v48 = vld [vmem:[%s4135_s5 + $0x60] sm:$0xff] }
 0x418   : > { %3513 = vtanh.f32 %v2280_v43  ;;  %v2281_v20 = vadd.f32 %v2265_v27, %v1620_v52  ;;  %v3496_v15 = vpop.eup %3495  ;;  %v2219_v49 = vadd.f32 1.0, %v3494_v14 }
 0x419   : > { %3515 = vrcp.f32 %v2108_v55  ;;  %v3498_v25 = vpop.eup %3497  ;;  %v2325_v10 = vmul.f32 %v3496_v15, %v2309_v61  ;;  %v4831_v55 = vld [vmem:[#allocation36_spill] sm:$0xff]  ;;  %v3536_v61 = vld [vmem:[%s4135_s5 + $0x68] sm:$0xff] }
 0x41a   : > { %3517 = vtanh.f32 %v2281_v20  ;;  %v2326_v5 = vmul.f32 %v3498_v25, %v2310_v35 }
 0x41b   : > { %v3500_v46 = vpop.eup %3499  ;;  %3519 = vrcp.f32 %v2218_v19  ;;  %v4605_v13 = vadd.f32 %v2341_v17, %v2325_v10  ;;  %v3537_v17 = vld [vmem:[%s4135_s5 + $0x70] sm:$0xff] }
 0x41c   : > { %v2266_v40 = vmul.f32 %v3500_v46, %v2018_v60  ;;  %v3502_v59 = vpop.eup %3501  ;;  %v4607_v16 = vadd.f32 %v2342_v22, %v2326_v5 }
 0x41d   : > { %v3504_v32 = vpop.eup %3503  ;;  %2373 = vst [vmem:[%s4135_s5 + $0x40] sm:$0xff] %v4605_v13  ;;  %v2311_v58 = vsub.f32 1.0, %v3502_v59  ;;  %v2343_v4 = vmul.f32 %v3533_v33, %v3502_v59 }
 0x41e   : > { %v2282_v31 = vadd.f32 %v2266_v40, %v1623_v12  ;;  %v3506_v7 = vpop.eup %3505  ;;  %2374 = vst [vmem:[%s4135_s5 + $0x48] sm:$0xff] %v4607_v16  ;;  %v2312_v34 = vsub.f32 1.0, %v3504_v32  ;;  %v2344_v21 = vmul.f32 %v3534_v38, %v3504_v32  ;;  %v3538_v40 = vld [vmem:[%s4135_s5 + $0x78] sm:$0xff] }
 0x41f   : > { %v2220_v3 = vadd.f32 1.0, %v3506_v7 }
 0x420   : > { %v3508_v28 = vpop.eup %3507  ;;  %3521 = vtanh.f32 %v2282_v31 }
 0x421   : > { %v3510_v36 = vpop.eup %3509  ;;  %3523 = vrcp.f32 %v2219_v49  ;;  %v2267_v0 = vmul.f32 %v3508_v28, %v2023_v53 }
 0x422   : > { %v2327_v37 = vmul.f32 %v3510_v36, %v2311_v58  ;;  %v3512_v11 = vpop.eup %3511 }
 0x423   : > { %v2283_v42 = vadd.f32 %v2267_v0, %v1628_v18  ;;  %v2313_v51 = vsub.f32 1.0, %v3512_v11  ;;  %v2345_v56 = vmul.f32 %v3535_v48, %v3512_v11 }
 0x424   : > { %v2359_v62 = vadd.f32 %v2343_v4, %v2327_v37 }
 0x425   : > { %v3514_v6 = vpop.eup %3513  ;;  %3525 = vtanh.f32 %v2283_v42 }
 0x426   : > { %v3516_v63 = vpop.eup %3515  ;;  %2375 = vst [vmem:[%s4135_s5 + $0x50] sm:$0xff] %v2359_v62  ;;  %v2328_v50 = vmul.f32 %v3514_v6, %v2312_v34  ;;  %3527 = vrcp.f32 %v2220_v3 }
 0x427   : > { %v3518_v2 = vpop.eup %3517  ;;  %v2268_v39 = vmul.f32 %v3516_v63, %v2026_v23 }
 0x428   : > { %v2360_v52 = vadd.f32 %v2344_v21, %v2328_v50  ;;  %v2329_v43 = vmul.f32 %v3518_v2, %v2313_v51  ;;  %v3520_v27 = vpop.eup %3519 }
 0x429   : > { %v2284_v26 = vadd.f32 %v2268_v39, %v4831_v55  ;;  %v2314_v60 = vsub.f32 1.0, %v3520_v27  ;;  %v2346_v20 = vmul.f32 %v3536_v61, %v3520_v27 }
 0x42a   : > { %2376 = vst [vmem:[%s4135_s5 + $0x58] sm:$0xff] %v2360_v52  ;;  %v2361_v45 = vadd.f32 %v2345_v56, %v2329_v43 }
 0x42b   : > { %3529 = vtanh.f32 %v2284_v26 }
 0x42c   : > { %2377 = vst [vmem:[%s4135_s5 + $0x60] sm:$0xff] %v2361_v45 }
 0x42d   : > { %v3522_v14 = vpop.eup %3521 }
 0x42e   : > { %v3524_v19 = vpop.eup %3523  ;;  %v2330_v15 = vmul.f32 %v3522_v14, %v2314_v60 }
 0x42f   : > { %v2315_v25 = vsub.f32 1.0, %v3524_v19  ;;  %v2347_v10 = vmul.f32 %v3537_v17, %v3524_v19 }
 0x430   : > { %v2362_v35 = vadd.f32 %v2346_v20, %v2330_v15 }
 0x432   : > { %v3526_v54 = vpop.eup %3525  ;;  %2378 = vst [vmem:[%s4135_s5 + $0x68] sm:$0xff] %v2362_v35 }
 0x433   : > { %v2331_v46 = vmul.f32 %v3526_v54, %v2315_v25  ;;  %v3528_v1 = vpop.eup %3527 }
 0x434   : > { %v2316_v5 = vsub.f32 1.0, %v3528_v1  ;;  %v2348_v59 = vmul.f32 %v3538_v40, %v3528_v1 }
 0x435   : > { %v2363_v22 = vadd.f32 %v2347_v10, %v2331_v46 }
 0x437   : > { %2379 = vst [vmem:[%s4135_s5 + $0x70] sm:$0xff] %v2363_v22 }
 0x438   : > { %v3530_v12 = vpop.eup %3529 }
 0x439   : > { %v2332_v49 = vmul.f32 %v3530_v12, %v2316_v5  ;;  %2384 = sbr.rel (%p2727_p13) target bundleno = 1094 (0x446), region = 80 }
 0x43b   : > { %v2364_v32 = vadd.f32 %v2348_v59, %v2332_v49 }
 0x43d   : > { %2380 = vst [vmem:[%s4135_s5 + $0x78] sm:$0xff] %v2364_v32 }
 0x43e   : > { %2385 = vst [vmem:[%s4099_s24] sm:$0xff] %v4511_v47  ;;  %2386 = vst [vmem:[%s4099_s24 + $0x8] sm:$0xff] %v4550_v8 }
 0x43f   : > { %2387 = vst [vmem:[%s4099_s24 + $0x10] sm:$0xff] %v4524_v9  ;;  %2388 = vst [vmem:[%s4099_s24 + $0x18] sm:$0xff] %v4540_v30 }
 0x440   : > { %2389 = vst [vmem:[%s4099_s24 + $0x20] sm:$0xff] %v4566_v44  ;;  %2390 = vst [vmem:[%s4099_s24 + $0x28] sm:$0xff] %v4589_v41 }
 0x441   : > { %2391 = vst [vmem:[%s4099_s24 + $0x30] sm:$0xff] %v4570_v57  ;;  %2392 = vst [vmem:[%s4099_s24 + $0x38] sm:$0xff] %v4583_v24 }
 0x442   : > { %2393 = vst [vmem:[%s4099_s24 + $0x40] sm:$0xff] %v4605_v13  ;;  %2394 = vst [vmem:[%s4099_s24 + $0x48] sm:$0xff] %v4607_v16 }
 0x443   : > { %2395 = vst [vmem:[%s4099_s24 + $0x50] sm:$0xff] %v2359_v62  ;;  %2396 = vst [vmem:[%s4099_s24 + $0x58] sm:$0xff] %v2360_v52 }
 0x444   : > { %2397 = vst [vmem:[%s4099_s24 + $0x60] sm:$0xff] %v2361_v45  ;;  %2398 = vst [vmem:[%s4099_s24 + $0x68] sm:$0xff] %v2362_v35 }
 0x445   : > { %2399 = vst [vmem:[%s4099_s24 + $0x70] sm:$0xff] %v2363_v22  ;;  %2400 = vst [vmem:[%s4099_s24 + $0x78] sm:$0xff] %v2364_v32 }
 0x446 PF: > { %s4833_s16 = sld [smem:[#allocation20_spill]]  ;;  %s2415_s5 = sshll.u32 %s4099_s24, 4  ;;  %s4666_s5 = int_to_ptr.vmem [resolvable:$true] %s2415_s5 }
 0x447   : > { %s4834_s18 = sld [smem:[#allocation41_spill]]  ;;  %s4670_s14 = scalar_lea.sflag [#allocation6], %s336_s1 }
 0x448   : > { %s3673_s15 = scalar_lea.vmem %s4666_s5, 2048  ;;  %p4835_p6 = scmp.ne.s32.totalorder %s4781_s19, 0 }
 0x449   : > { %p3674_p4 = scmp.ne.s32.totalorder %s4666_s5, %s3673_s15  ;;  %s3819_s3 = smov [#allocation13]  }
 0x44a   : > { %s3677_s22 = sshll.u32 %s3819_s3, 4  ;;  %s3678_s22 = int_to_ptr.vmem [resolvable:$false] %s3677_s22 }
 0x44b   : > { %p3675_p10 = pnand %p3674_p4, %p4835_p6  ;;  %s3679_s17 = scalar_lea.vmem %s3678_s22, 4096 }
 0x44c   : > { %s2768_s8 = sshll.u32 %s4833_s16, 11  ;;  %p3680_p11 = scmp.lt.s32.totalorder %s4666_s5, %s3678_s22 }
 0x44d   : > { %s4663_s20 = scalar_lea.hbm %s4834_s18, %s2768_s8  ;;  %p3676_p3 = pneg %p3675_p10 }
 0x44e   : > { %p3681_p12 = scmp.lt.s32.totalorder %s3679_s17, %s3673_s15 }
 0x450   : > { %p3682_p5 = por %p3681_p12, %p3680_p11 }
 0x452   : > { %p3683_p9 = pnand %p3682_p5, %p3676_p3 }
 0x454   : > { %3686 = shalt.err (!%p3683_p9)
}
 0x455   : > { %s3687_s1 = scalar_lea.hbm %s4663_s20, 2048  ;;  %s3691_s30 = scalar_lea.hbm %s4834_s18, 4096 }
 0x456   : > { %p3688_p7 = scmp.ne.s32.totalorder %s4663_s20, %s3687_s1  ;;  %p3692_p1 = scmp.lt.s32.totalorder %s4663_s20, %s4834_s18 }
 0x457   : > { %p3693_p2 = scmp.lt.s32.totalorder %s3691_s30, %s3687_s1 }
 0x458   : > { %p3689_p0 = pnand %p3688_p7, %p4835_p6 }
 0x459   : > { %p3694_p13 = por %p3693_p2, %p3692_p1 }
 0x45a   : > { %p3690_p8 = pneg %p3689_p0 }
 0x45c   : > { %p3695_p4 = pnand %p3694_p13, %p3690_p8 }
 0x45e   : > { %3698 = shalt.err (!%p3695_p4)
}
 0x45f   : > { %s3820_s27 = smov 128   ;;  %s3821_s12 = smov 8  }
 0x460   : > { %3128 = dma.vmem_to_hbm [thread:$0]  (%p4835_p6), %s4666_s5, 2048, %s4663_s20, %s4670_s14, %s3820_s27, %s3820_s27, %s3821_s12  }
 0x461 PF: > { %s4836_s15 = sld [smem:[#allocation19_spill]]  ;;  %p3158_p10 = scmp.ge.s32.totalorder %s3805_s11, 2 }
 0x462   : > { %s4837_s3 = sld [smem:[#allocation24_spill]] }
 0x467   : > { %s2430_s22 = sand.u32 1, %s4836_s15  }
 0x468   : > { %p4838_p3 = scmp.ne.s32.totalorder %s4837_s3, 0  ;;  %s2431_s17 = scalar_lea.sflag [#allocation6], %s2430_s22 }
 0x46a   : > { %p3148_p11 = pnand %p3158_p10, %p4838_p3 }
 0x46c   : > { %p3149_p12 = pneg %p3148_p11 }
 0x46e   : > { %3760 = dma.done.wait (%p3149_p12), %s2431_s17, 2048  }
 0x46f   : > { %3762 = vsyncadd (%p3149_p12), %s2431_s17, 4294965248  ;;  %s25_s11 = sadd.s32 1, %s3805_s11   ;;  %s4839_s24 = smov %s3769_s25 }
 0x470   : > { %p22_p5 = scmp.ge.s32.totalorder %s25_s11, 8   ;;  %s4840_s25 = smov %s3773_s26 }
 0x471   : > { %s4841_s26 = smov %s4063_s6  ;;  %s4842_s27 = smov %s3781_s28 }
 0x472   : > { %s4843_s28 = smov %s3785_s29  ;;  %s4844_s29 = smov %s3997_s23 }
 0x473   : > { %s4845_s30 = smov %s3797_s9  ;;  %s4846_s8 = smov %s3801_s10 }
 0x474   : > { %s4847_s9 = smov %s4850_s21  ;;  %s4848_s10 = smov %s4854_s7 }
 0x475   :  { %24 = sbr.rel (!%p22_p5) target bundleno = 17 (0x11), region = 130 }
 0x47a   :  { %2436 = vsyncpa [#allocation5], 1 }
 0x47b   :  { %2438 = vsyncpa [#allocation5 + $0x1], 1 }
 0x47c   :  { %2439 = vsyncpa [#allocation8], 1 }
 0x47d   :  { %2441 = vsyncpa [#allocation8 + $0x1], 1 }
 0x47e   :  { %2442 = vsyncpa [#allocation11], 1 }
 0x47f   :  { %2443 = vsyncpa [#allocation6], 1 }
 0x480   :  { %2445 = vsyncpa [#allocation6 + $0x1], 1 }

</bundles_post_ra>
